<compile_context>
chip_gen: v7x
topology: tpu7x:2x2x1
jax: 0.10.0
libtpu: 0.0.40
codegen_flags: <defaults>
</compile_context>

<pallas_src>
import functools

import jax
import jax.numpy as jnp
from jax.experimental import pallas as pl
from jax.experimental.pallas import tpu as pltpu


def context_encoder_kernel(x_ref, w1_ref, b1_ref, w2_ref, b2_ref, w3_ref, b3_ref,
                           mt_ref, ms_ref, out_ref, *, L, d_out):
    """One grid step = Bb contexts; each context is one lane-dense row of x."""
    x = x_ref[...]                                                    # [Bb, L*d_in]

    # Block-diagonal MLP: each d_in-lane group is an independent context step.
    # MXU feeds may be bf16; accumulation, biases and ReLU stay f32.
    h = jnp.dot(x, w1_ref[...], preferred_element_type=jnp.float32) + b1_ref[...]
    h = jnp.maximum(h, 0.0)
    h = jnp.dot(h.astype(w2_ref.dtype), w2_ref[...],
                preferred_element_type=jnp.float32) + b2_ref[...]
    h = jnp.maximum(h, 0.0)
    lat = jnp.dot(h.astype(w3_ref.dtype), w3_ref[...],
                  preferred_element_type=jnp.float32) + b3_ref[...]   # [Bb, L*d_out] f32

    # Transpose once so contexts live on the lane axis; everything downstream
    # (including the output store) is then fully lane-dense.
    lat_t = lat.T                                                     # [L*d_out, Bb]
    mean_t = jnp.dot(mt_ref[...], lat_t,
                     preferred_element_type=jnp.float32)              # tiled per-context mean
    cen = lat_t - mean_t
    ss = jnp.dot(ms_ref[...], cen * cen,
                 preferred_element_type=jnp.float32)                  # [d_out, Bb] sum of squares
    # Unbiased (correction=1) std, matching torch.std's default.
    # TODO(synk): L == 1 yields NaN from the 0/0, exactly like torch.std(dim=1).
    std = jnp.sqrt(ss / jnp.float32(L - 1))
    mean = mean_t[:d_out, :]                                          # [d_out, Bb]

    # Single unmasked, lane-dense store: rows 0..d_out-1 = mean, rest = std.
    out_ref[...] = jnp.concatenate([mean, std], axis=0)               # [2*d_out, Bb]


def _round_up(n, m):
    return -(-n // m) * m


def _block_diag_repeat(w, L):
    """[d_in, d_out] -> block-diagonal [L*d_in, L*d_out] repeating w L times."""
    d_in, d_out = w.shape
    eye = jnp.eye(L, dtype=w.dtype)
    return (eye[:, None, :, None] * w[None, :, None, :]).reshape(L * d_in, L * d_out)


def context_encoder_forward(x, params, *, batch_block=None,
                            compute_dtype=jnp.bfloat16):
    """x: [B, L, d_in] f32.  params: w1,b1,w2,b2,w3,b3 (w: [in,out], b: [1,out]).

    Returns (mean, std), both [B, d_out]: per-context mean and unbiased std over
    the context-length axis, matching the PyTorch ContextEncoder forward.
    """
    B, L, d_in = x.shape
    w1, b1 = params["w1"], params["b1"]
    w2, b2 = params["w2"], params["b2"]
    w3, b3 = params["w3"], params["b3"]
    h0, h1, d_out = w1.shape[1], w2.shape[1], w3.shape[1]
    # TODO(synk): the kernel is specialized to exactly two hidden layers (the
    # reference config hidden_sizes=(32, 32)); arbitrary depth needs a loop here.

    # ---- contexts per grid step -------------------------------------------
    # Bb is a multiple of 128 so both the transposed reduction operands and the
    # [2*d_out, Bb] output block are fully lane-dense.  For B >= 256 we force
    # >= 2 grid steps so the "parallel" axis shards across both v7x TensorCores.
    if batch_block is None:
        if B < 256:
            Bb = _round_up(B, 128)
        else:
            Bb = min(512, _round_up(-(-B // 2), 128))
    else:
        Bb = batch_block
    if Bb % 128 != 0:
        raise ValueError("batch_block must be a multiple of 128")
    n_steps = -(-B // Bb)
    B_pad = n_steps * Bb

    # ---- lane-dense operands ------------------------------------------------
    # Fold L into the lane axis (free, contiguous reshape).  Padded tail rows
    # are zeros -> latents constant over L -> std exactly 0, no NaN; they are
    # sliced away below.
    x2d = x.reshape(B, L * d_in)
    if B_pad != B:
        x2d = jnp.pad(x2d, ((0, B_pad - B), (0, 0)))

    w1_bd = _block_diag_repeat(w1, L)                  # [L*d_in, L*h0]
    w2_bd = _block_diag_repeat(w2, L)                  # [L*h0,  L*h1]
    w3_bd = _block_diag_repeat(w3, L)                  # [L*h1,  L*d_out]
    b1_t = jnp.tile(b1, (1, L))
    b2_t = jnp.tile(b2, (1, L))
    b3_t = jnp.tile(b3, (1, L))

    if compute_dtype != jnp.float32:
        # bf16 MXU feed (v6e/v7x native); reductions / VPU math stay f32.
        x2d = x2d.astype(compute_dtype)
        w1_bd = w1_bd.astype(compute_dtype)
        w2_bd = w2_bd.astype(compute_dtype)
        w3_bd = w3_bd.astype(compute_dtype)

    # Reduction matrices (f32, applied to the f32 latents on the MXU):
    #   mt @ lat.T -> per-context mean replicated over the L lane-groups,
    #   ms @ (..)  -> sum over the L lane-groups.
    ld = L * d_out
    grp = jnp.arange(ld) % d_out
    mt = (grp[:, None] == grp[None, :]).astype(jnp.float32) / L           # [ld, ld]
    ms = (jnp.arange(d_out)[:, None] == grp[None, :]).astype(jnp.float32)  # [d_out, ld]

    def full2d(arr):
        return pl.BlockSpec(arr.shape, lambda i: (0, 0))   # resident across steps

    flops = 2 * B_pad * (L * d_in * L * h0 + L * h0 * L * h1 + L * h1 * ld
                         + ld * ld + ld * d_out)
    bytes_accessed = sum(int(a.size) * a.dtype.itemsize for a in
                         (x2d, w1_bd, b1_t, w2_bd, b2_t, w3_bd, b3_t, mt, ms))
    bytes_accessed += B_pad * 2 * d_out * 4

    kernel = functools.partial(context_encoder_kernel, L=L, d_out=d_out)

    out_t = pl.pallas_call(
        kernel,
        out_shape=jax.ShapeDtypeStruct((2 * d_out, B_pad), jnp.float32),
        grid_spec=pl.GridSpec(
            grid=(n_steps,),
            in_specs=[
                pl.BlockSpec((Bb, L * d_in), lambda i: (i, 0)),
                full2d(w1_bd), full2d(b1_t),
                full2d(w2_bd), full2d(b2_t),
                full2d(w3_bd), full2d(b3_t),
                full2d(mt), full2d(ms),
            ],
            out_specs=pl.BlockSpec((2 * d_out, Bb), lambda i: (0, i)),
        ),
        compiler_params=pltpu.CompilerParams(
            dimension_semantics=("parallel",)),
        cost_estimate=pl.CostEstimate(
            flops=int(flops), transcendentals=int(B_pad * d_out),
            bytes_accessed=int(bytes_accessed)),
    )(x2d, w1_bd, b1_t, w2_bd, b2_t, w3_bd, b3_t, mt, ms)

    out = out_t[:, :B].T                                  # [B, 2*d_out]
    return out[:, :d_out], out[:, d_out:]


def init_params(key, d_in, hidden_sizes, d_out):
    """Deterministic PyTorch-style uniform(-1/sqrt(fan_in), 1/sqrt(fan_in)) init."""
    dims = [d_in] + list(hidden_sizes) + [d_out]
    params = {}
    for i in range(len(dims) - 1):
        key, kw, kb = jax.random.split(key, 3)
        fan_in, fan_out = dims[i], dims[i + 1]
        bound = 1.0 / jnp.sqrt(jnp.float32(fan_in))
        params[f"w{i + 1}"] = jax.random.uniform(
            kw, (fan_in, fan_out), jnp.float32, -bound, bound)
        params[f"b{i + 1}"] = jax.random.uniform(
            kb, (1, fan_out), jnp.float32, -bound, bound)
    return params


def reference_forward(x, params):
    """Pure-JAX reference mirroring the PyTorch module."""
    B, L, d_in = x.shape
    xf = x.reshape(-1, d_in)
    h = jnp.maximum(xf @ params["w1"] + params["b1"], 0.0)
    h = jnp.maximum(h @ params["w2"] + params["b2"], 0.0)
    out = h @ params["w3"] + params["b3"]
    lat = out.reshape(B, L, -1)
    return jnp.mean(lat, axis=1), jnp.std(lat, axis=1, ddof=1)


if __name__ == "__main__":
    # Shapes from the module config: context_dim d_in=4, hidden=(32, 32),
    # latent d_out=16, context_length L=8.
    hidden_sizes = (32, 32)
    d_in, d_out, L = 4, 16, 8
    key = jax.random.PRNGKey(0)
    key, kp = jax.random.split(key)
    params = init_params(kp, d_in, hidden_sizes, d_out)

    # Test 1: tiny batch, single grid step, f32 MXU feed.
    B1 = 2
    key, kx1 = jax.random.split(key)
    x1 = jax.random.normal(kx1, (B1, L, d_in), jnp.float32)
    mean1, std1 = context_encoder_forward(x1, params, compute_dtype=jnp.float32)
    jax.block_until_ready((mean1, std1))
    ref_m1, ref_s1 = reference_forward(x1, params)
    assert mean1.shape == (B1, d_out) and std1.shape == (B1, d_out)
    assert jnp.allclose(mean1, ref_m1, atol=5e-3, rtol=1e-2)
    assert jnp.allclose(std1, ref_s1, atol=5e-3, rtol=1e-2)

    # Test 2: tiled batch axis (two "parallel" grid steps) + padded tail, f32.
    B2 = 200
    key, kx2 = jax.random.split(key)
    x2 = jax.random.normal(kx2, (B2, L, d_in), jnp.float32)
    mean2, std2 = context_encoder_forward(x2, params, batch_block=128,
                                          compute_dtype=jnp.float32)
    jax.block_until_ready((mean2, std2))
    ref_m2, ref_s2 = reference_forward(x2, params)
    assert mean2.shape == (B2, d_out) and std2.shape == (B2, d_out)
    assert jnp.allclose(mean2, ref_m2, atol=5e-3, rtol=1e-2)
    assert jnp.allclose(std2, ref_s2, atol=5e-3, rtol=1e-2)

    # Test 3: default bf16 MXU feed (f32 accumulation / reductions), looser tol.
    mean3, std3 = context_encoder_forward(x1, params)
    jax.block_until_ready((mean3, std3))
    assert jnp.allclose(mean3, ref_m1, atol=5e-2, rtol=5e-2)
    assert jnp.allclose(std3, ref_s1, atol=5e-2, rtol=5e-2)

    print("KERNEL_OK")
</pallas_src>

<mosaic_0001>
module attributes {stable_mosaic.version = 11 : i64} {
  func.func @context_encoder_kernel(%arg0: i32, %arg1: memref<128x32xf32, #tpu.memory_space<vmem>>, %arg2: memref<32x256xf32, #tpu.memory_space<vmem>>, %arg3: memref<1x256xf32, #tpu.memory_space<vmem>>, %arg4: memref<256x256xf32, #tpu.memory_space<vmem>>, %arg5: memref<1x256xf32, #tpu.memory_space<vmem>>, %arg6: memref<256x128xf32, #tpu.memory_space<vmem>>, %arg7: memref<1x128xf32, #tpu.memory_space<vmem>>, %arg8: memref<128x128xf32, #tpu.memory_space<vmem>>, %arg9: memref<16x128xf32, #tpu.memory_space<vmem>>, %arg10: memref<32x128xf32, #tpu.memory_space<vmem>>) attributes {dimension_semantics = [#tpu.dimension_semantics<parallel>], iteration_bounds = array<i64: 1>, scalar_prefetch = 0 : i64, scratch_operands = 0 : i64, tpu.core_type = #tpu.core_type<tc>, window_params = [{transform_indices = @transform_0, window_bounds = array<i64: 128, 32>}, {pipeline_mode = #tpu.pipeline_mode<synchronous>, transform_indices = @transform_1, window_bounds = array<i64: 32, 256>}, {pipeline_mode = #tpu.pipeline_mode<synchronous>, transform_indices = @transform_2, window_bounds = array<i64: 1, 256>}, {pipeline_mode = #tpu.pipeline_mode<synchronous>, transform_indices = @transform_3, window_bounds = array<i64: 256, 256>}, {pipeline_mode = #tpu.pipeline_mode<synchronous>, transform_indices = @transform_4, window_bounds = array<i64: 1, 256>}, {pipeline_mode = #tpu.pipeline_mode<synchronous>, transform_indices = @transform_5, window_bounds = array<i64: 256, 128>}, {pipeline_mode = #tpu.pipeline_mode<synchronous>, transform_indices = @transform_6, window_bounds = array<i64: 1, 128>}, {pipeline_mode = #tpu.pipeline_mode<synchronous>, transform_indices = @transform_7, window_bounds = array<i64: 128, 128>}, {pipeline_mode = #tpu.pipeline_mode<synchronous>, transform_indices = @transform_8, window_bounds = array<i64: 16, 128>}, {transform_indices = @transform_9, window_bounds = array<i64: 32, 128>}]} {
    %c0 = arith.constant 0 : index
    %c0_0 = arith.constant 0 : index
    %0 = vector.load %arg1[%c0, %c0_0] : memref<128x32xf32, #tpu.memory_space<vmem>>, vector<128x32xf32>
    %c0_1 = arith.constant 0 : index
    %c0_2 = arith.constant 0 : index
    %1 = vector.load %arg2[%c0_1, %c0_2] : memref<32x256xf32, #tpu.memory_space<vmem>>, vector<32x256xf32>
    %cst = arith.constant dense<0.000000e+00> : vector<128x256xf32>
    %2 = tpu.matmul %0, %1, %cst {dimension_numbers = #tpu.dot_dimension_numbers<[1], [0], [0], [1], [0, 0, 1, 1], [], []>} : vector<128x32xf32>, vector<32x256xf32>, vector<128x256xf32> -> vector<128x256xf32>
    %c0_3 = arith.constant 0 : index
    %c0_4 = arith.constant 0 : index
    %3 = vector.load %arg3[%c0_3, %c0_4] : memref<1x256xf32, #tpu.memory_space<vmem>>, vector<1x256xf32>
    %4 = vector.broadcast %3 : vector<1x256xf32> to vector<128x256xf32>
    %5 = arith.addf %2, %4 : vector<128x256xf32>
    %cst_5 = arith.constant 0.000000e+00 : f32
    %6 = vector.broadcast %cst_5 : f32 to vector<128x256xf32>
    %7 = arith.maximumf %5, %6 : vector<128x256xf32>
    %c0_6 = arith.constant 0 : index
    %c0_7 = arith.constant 0 : index
    %8 = vector.load %arg4[%c0_6, %c0_7] : memref<256x256xf32, #tpu.memory_space<vmem>>, vector<256x256xf32>
    %cst_8 = arith.constant dense<0.000000e+00> : vector<128x256xf32>
    %9 = tpu.matmul %7, %8, %cst_8 {dimension_numbers = #tpu.dot_dimension_numbers<[1], [0], [0], [1], [0, 0, 1, 1], [], []>} : vector<128x256xf32>, vector<256x256xf32>, vector<128x256xf32> -> vector<128x256xf32>
    %c0_9 = arith.constant 0 : index
    %c0_10 = arith.constant 0 : index
    %10 = vector.load %arg5[%c0_9, %c0_10] : memref<1x256xf32, #tpu.memory_space<vmem>>, vector<1x256xf32>
    %11 = vector.broadcast %10 : vector<1x256xf32> to vector<128x256xf32>
    %12 = arith.addf %9, %11 : vector<128x256xf32>
    %cst_11 = arith.constant 0.000000e+00 : f32
    %13 = vector.broadcast %cst_11 : f32 to vector<128x256xf32>
    %14 = arith.maximumf %12, %13 : vector<128x256xf32>
    %c0_12 = arith.constant 0 : index
    %c0_13 = arith.constant 0 : index
    %15 = vector.load %arg6[%c0_12, %c0_13] : memref<256x128xf32, #tpu.memory_space<vmem>>, vector<256x128xf32>
    %cst_14 = arith.constant dense<0.000000e+00> : vector<128x128xf32>
    %16 = tpu.matmul %14, %15, %cst_14 {dimension_numbers = #tpu.dot_dimension_numbers<[1], [0], [0], [1], [0, 0, 1, 1], [], []>} : vector<128x256xf32>, vector<256x128xf32>, vector<128x128xf32> -> vector<128x128xf32>
    %c0_15 = arith.constant 0 : index
    %c0_16 = arith.constant 0 : index
    %17 = vector.load %arg7[%c0_15, %c0_16] : memref<1x128xf32, #tpu.memory_space<vmem>>, vector<1x128xf32>
    %18 = vector.broadcast %17 : vector<1x128xf32> to vector<128x128xf32>
    %19 = arith.addf %16, %18 : vector<128x128xf32>
    %20 = tpu.transpose %19, [1, 0] : vector<128x128xf32> -> vector<128x128xf32>
    %c0_17 = arith.constant 0 : index
    %c0_18 = arith.constant 0 : index
    %21 = vector.load %arg8[%c0_17, %c0_18] : memref<128x128xf32, #tpu.memory_space<vmem>>, vector<128x128xf32>
    %cst_19 = arith.constant dense<0.000000e+00> : vector<128x128xf32>
    %22 = tpu.matmul %21, %20, %cst_19 {dimension_numbers = #tpu.dot_dimension_numbers<[1], [0], [0], [1], [0, 0, 1, 1], [], []>} : vector<128x128xf32>, vector<128x128xf32>, vector<128x128xf32> -> vector<128x128xf32>
    %23 = arith.subf %20, %22 : vector<128x128xf32>
    %c0_20 = arith.constant 0 : index
    %c0_21 = arith.constant 0 : index
    %24 = vector.load %arg9[%c0_20, %c0_21] : memref<16x128xf32, #tpu.memory_space<vmem>>, vector<16x128xf32>
    %25 = arith.mulf %23, %23 : vector<128x128xf32>
    %cst_22 = arith.constant dense<0.000000e+00> : vector<16x128xf32>
    %26 = tpu.matmul %24, %25, %cst_22 {dimension_numbers = #tpu.dot_dimension_numbers<[1], [0], [0], [1], [0, 0, 1, 1], [], []>} : vector<16x128xf32>, vector<128x128xf32>, vector<16x128xf32> -> vector<16x128xf32>
    %cst_23 = arith.constant 7.000000e+00 : f32
    %27 = vector.broadcast %cst_23 : f32 to vector<16x128xf32>
    %28 = arith.divf %26, %27 : vector<16x128xf32>
    %29 = math.sqrt %28 : vector<16x128xf32>
    %30 = vector.extract_strided_slice %22 {offsets = [0, 0], sizes = [16, 128], strides = [1, 1]} : vector<128x128xf32> to vector<16x128xf32>
    %31 = tpu.concatenate %30, %29 in 0 : vector<16x128xf32>, vector<16x128xf32> -> vector<32x128xf32>
    %c0_24 = arith.constant 0 : index
    %c0_25 = arith.constant 0 : index
    %32 = vector.load %arg10[%c0_24, %c0_25] : memref<32x128xf32, #tpu.memory_space<vmem>>, vector<32x128xf32>
    tpu.vector_store %arg10[%c0_24, %c0_25], %31 {strides = array<i32>} : memref<32x128xf32, #tpu.memory_space<vmem>>, vector<32x128xf32>,
    return
  }
  func.func @transform_0(%arg0: i32) -> (i32, i32) {
    %c0_i32 = arith.constant 0 : i32
    %c0_i32_0 = arith.constant 0 : i32
    return %arg0, %c0_i32 : i32, i32
  }
  func.func @transform_1(%arg0: i32) -> (i32, i32) {
    %c0_i32 = arith.constant 0 : i32
    %c0_i32_0 = arith.constant 0 : i32
    %c0_i32_1 = arith.constant 0 : i32
    return %c0_i32, %c0_i32_0 : i32, i32
  }
  func.func @transform_2(%arg0: i32) -> (i32, i32) {
    %c0_i32 = arith.constant 0 : i32
    %c0_i32_0 = arith.constant 0 : i32
    %c0_i32_1 = arith.constant 0 : i32
    return %c0_i32, %c0_i32_0 : i32, i32
  }
  func.func @transform_3(%arg0: i32) -> (i32, i32) {
    %c0_i32 = arith.constant 0 : i32
    %c0_i32_0 = arith.constant 0 : i32
    %c0_i32_1 = arith.constant 0 : i32
    return %c0_i32, %c0_i32_0 : i32, i32
  }
  func.func @transform_4(%arg0: i32) -> (i32, i32) {
    %c0_i32 = arith.constant 0 : i32
    %c0_i32_0 = arith.constant 0 : i32
    %c0_i32_1 = arith.constant 0 : i32
    return %c0_i32, %c0_i32_0 : i32, i32
  }
  func.func @transform_5(%arg0: i32) -> (i32, i32) {
    %c0_i32 = arith.constant 0 : i32
    %c0_i32_0 = arith.constant 0 : i32
    %c0_i32_1 = arith.constant 0 : i32
    return %c0_i32, %c0_i32_0 : i32, i32
  }
  func.func @transform_6(%arg0: i32) -> (i32, i32) {
    %c0_i32 = arith.constant 0 : i32
    %c0_i32_0 = arith.constant 0 : i32
    %c0_i32_1 = arith.constant 0 : i32
    return %c0_i32, %c0_i32_0 : i32, i32
  }
  func.func @transform_7(%arg0: i32) -> (i32, i32) {
    %c0_i32 = arith.constant 0 : i32
    %c0_i32_0 = arith.constant 0 : i32
    %c0_i32_1 = arith.constant 0 : i32
    return %c0_i32, %c0_i32_0 : i32, i32
  }
  func.func @transform_8(%arg0: i32) -> (i32, i32) {
    %c0_i32 = arith.constant 0 : i32
    %c0_i32_0 = arith.constant 0 : i32
    %c0_i32_1 = arith.constant 0 : i32
    return %c0_i32, %c0_i32_0 : i32, i32
  }
  func.func @transform_9(%arg0: i32) -> (i32, i32) {
    %c0_i32 = arith.constant 0 : i32
    %c0_i32_0 = arith.constant 0 : i32
    return %c0_i32, %arg0 : i32, i32
  }
}

</mosaic_0001>

<bundles_post_ra>
// kernel: tpu_custom_call.1
= control target key start
LH: loop header
LB: loop body
LE: loop exit
PB: predicated region body
PF: predicated region fallthrough
CT: control target
= control target key end

     0   :  { %14 = vsyncpa [#allocation3], 0  ;;  %s2088_s0 = inlined_call_operand.vmem [shape: f32[128,32], index: 0, kind: input, shape index: {}]   ;;  %s2089_s1 = inlined_call_operand.hbm [shape: f32[32,256], index: 1, kind: input, shape index: {}]   ;;  %s2090_s2 = inlined_call_operand.vmem [shape: f32[1,256], index: 2, kind: input, shape index: {}]   ;;  %s2091_s3 = inlined_call_operand.hbm [shape: f32[256,256], index: 3, kind: input, shape index: {}]   ;;  %s2092_s4 = inlined_call_operand.vmem [shape: f32[1,256], index: 4, kind: input, shape index: {}]   ;;  %s2093_s5 = inlined_call_operand.hbm [shape: f32[256,128], index: 5, kind: input, shape index: {}]   ;;  %s2094_s6 = inlined_call_operand.vmem [shape: f32[1,128], index: 6, kind: input, shape index: {}]   ;;  %s2095_s7 = inlined_call_operand.vmem [shape: f32[128,128], index: 7, kind: input, shape index: {}]   ;;  %s2096_s8 = inlined_call_operand.vmem [shape: f32[16,128], index: 8, kind: input, shape index: {}]   ;;  %s2097_s9 = inlined_call_operand.hbm [shape: f32[32,128], index: 9, kind: output, shape index: {}]  }
   0x1   :  { %15 = vsyncpa [#allocation6], 0 }
   0x2   :  { %16 = vsyncpa [#allocation4], 0  ;;  %s1659_s30 = smov [#allocation5]   ;;  %s1660_s11 = smov [#allocation2]  }
   0x3   :  { %s38_s10 = sshll.u32 %s1659_s30, 4  ;;  %s24_s12 = sshll.u32 %s1660_s11, 4  ;;  %s39_s10 = int_to_ptr.vmem [resolvable:$true] %s38_s10  ;;  %s1718_s12 = int_to_ptr.vmem [resolvable:$true] %s24_s12 }
   0x4   :  { %s1565_s15 = scalar_lea.hbm %s2091_s3, 8192 }
   0x5   :  { %p1566_p0 = scmp.ne.s32.totalorder %s2091_s3, %s1565_s15  ;;  %p1569_p1 = scmp.lt.u32.totalorder %s1565_s15, %s2091_s3 }
   0x7   :  { %p1571_p2 = pnand %p1569_p1, %p1566_p0 }
   0x9   :  { %1574 = shalt.err (!%p1571_p2)
}
   0xa   :  { %s1575_s20 = scalar_lea.vmem %s39_s10, 8192  ;;  %p1580_p4 = scmp.lt.s32.totalorder %s39_s10, %s39_s10 }
   0xb   :  { %p1576_p3 = scmp.ne.s32.totalorder %s39_s10, %s1575_s20  ;;  %p1581_p5 = scmp.lt.s32.totalorder %s1575_s20, %s1575_s20 }
   0xd   :  { %p1582_p6 = por %p1581_p5, %p1580_p4 }
   0xf   :  { %p1583_p7 = pnand %p1582_p6, %p1576_p3 }
  0x11   :  { %1586 = shalt.err (!%p1583_p7)
}
  0x12   :  { %s1661_s21 = smov 256   ;;  %s1662_s22 = smov 16  }
  0x13   :  { %44 = dma.hbm_to_vmem [thread:$0]  %s2091_s3, 8192, %s39_s10, [#allocation6], %s1661_s21, %s1661_s21, %s1662_s22  }
  0x14   :  { %s1587_s27 = scalar_lea.hbm %s2089_s1, 1024 }
  0x15   :  { %p1588_p8 = scmp.ne.s32.totalorder %s2089_s1, %s1587_s27  ;;  %p1591_p9 = scmp.lt.u32.totalorder %s1587_s27, %s2089_s1 }
  0x17   :  { %p1593_p10 = pnand %p1591_p9, %p1588_p8 }
  0x19   :  { %1596 = shalt.err (!%p1593_p10)
}
  0x1a   :  { %s1597_s13 = scalar_lea.vmem %s1718_s12, 1024  ;;  %p1602_p12 = scmp.lt.s32.totalorder %s1718_s12, %s1718_s12 }
  0x1b   :  { %p1598_p11 = scmp.ne.s32.totalorder %s1718_s12, %s1597_s13  ;;  %p1603_p13 = scmp.lt.s32.totalorder %s1597_s13, %s1597_s13 }
  0x1d   :  { %p1604_p0 = por %p1603_p13, %p1602_p12 }
  0x1f   :  { %p1605_p1 = pnand %p1604_p0, %p1598_p11 }
  0x21   :  { %1608 = shalt.err (!%p1605_p1)
}
  0x22   :  { %30 = dma.hbm_to_vmem [thread:$0]  %s2089_s1, 1024, %s1718_s12, [#allocation3], %s1661_s21, %s1661_s21, %s1662_s22  }
  0x23   :  { %s1663_s14 = smov [#allocation7]   ;;  %s1609_s18 = scalar_lea.hbm %s2093_s5, 4096 }
  0x24   :  { %s52_s15 = sshll.u32 %s1663_s14, 4  ;;  %p1610_p2 = scmp.ne.s32.totalorder %s2093_s5, %s1609_s18  ;;  %s53_s15 = int_to_ptr.vmem [resolvable:$true] %s52_s15 }
  0x25   :  { %p1613_p3 = scmp.lt.u32.totalorder %s1609_s18, %s2093_s5 }
  0x27   :  { %p1615_p4 = pnand %p1613_p3, %p1610_p2 }
  0x29   :  { %1618 = shalt.err (!%p1615_p4)
}
  0x2a   :  { %s1619_s25 = scalar_lea.vmem %s53_s15, 4096  ;;  %p1624_p6 = scmp.lt.s32.totalorder %s53_s15, %s53_s15 }
  0x2b   :  { %p1620_p5 = scmp.ne.s32.totalorder %s53_s15, %s1619_s25  ;;  %p1625_p7 = scmp.lt.s32.totalorder %s1619_s25, %s1619_s25 }
  0x2d   :  { %p1626_p8 = por %p1625_p7, %p1624_p6 }
  0x2f   :  { %p1627_p9 = pnand %p1626_p8, %p1620_p5 }
  0x31   :  { %1630 = shalt.err (!%p1627_p9)
}
  0x32   :  { %s1664_s1 = smov 128   ;;  %s1665_s12 = smov 8  }
  0x33   :  { %58 = dma.hbm_to_vmem [thread:$0]  %s2093_s5, 4096, %s53_s15, [#allocation6], %s1664_s1, %s1664_s1, %s1665_s12  }
  0x34   :  { %1653 = dma.done.wait [#allocation3], 1024  }
  0x35   :  { %1654 = vsyncadd [#allocation3], 4294966272 }
  0x36   :  { %1655 = dma.done.wait [#allocation6], 12288  }
  0x37   :  { %1656 = vsyncadd [#allocation6], 4294955008  ;;  %v1666_v0 = vmov 0.0   ;;  %v91_v1 = vld [vmem:[#allocation2 + $0x8] sm:$0xff]  ;;  %v93_v2 = vld [vmem:[#allocation2 + $0x18] sm:$0xff]  ;;  %vm110_vm0 = vcmask 261120  }
  0x38   :  { %223 = vmatprep.mubr.f32.mxu0 %v1666_v0  ;;  %v90_v3 = vld [vmem:[#allocation2] sm:$0xff]  ;;  %v1384_v4 = vpack.c.bf16 %v93_v2, %v91_v1  ;;  %v92_v5 = vld [vmem:[#allocation2 + $0x10] sm:$0xff]  ;;  %v95_v6 = vld [vmem:[#allocation2 + $0x28] sm:$0xff]  ;;  %s1667_s22 = smov [#allocation8]  }
  0x39   :  { %v97_v7 = vld [vmem:[#allocation2 + $0x38] sm:$0xff]  ;;  %v1386_v8 = vpack.c.bf16 %v92_v5, %v90_v3  ;;  %v94_v10 = vld [vmem:[#allocation2 + $0x20] sm:$0xff]  ;;  %v96_v11 = vld [vmem:[#allocation2 + $0x30] sm:$0xff]  ;;  %s1133_s5 = sshll.u32 %s1667_s22, 4  ;;  %s1134_s5 = int_to_ptr.vmem [resolvable:$true] %s1133_s5 }
  0x3a   :  { %v1388_v9 = vpack.c.bf16 %v97_v7, %v95_v6  ;;  %1385 = vmatprep.subr.bf16.mxu0 %v1384_v4  ;;  %v1390_v12 = vpack.c.bf16 %v96_v11, %v94_v10  ;;  %v74_v13 = vld [vmem:[%s2088_s0] sm:$0xff]  ;;  %v353_v14 = vld [vmem:[#allocation5 + $0x8] sm:$0xff]  ;;  %v355_v15 = vld [vmem:[#allocation5 + $0x18] sm:$0xff]  ;;  %p1636_p11 = scmp.lt.s32.totalorder %s1134_s5, %s1134_s5 }
  0x3b   :  { %1387 = vmatpush1.bf16.msra.mxu0 %v1386_v8  ;;  %v352_v16 = vld [vmem:[#allocation5] sm:$0xff]  ;;  %v1392_v17 = vpack.c.bf16 %v355_v15, %v353_v14  ;;  %v354_v18 = vld [vmem:[#allocation5 + $0x10] sm:$0xff]  ;;  %v357_v19 = vld [vmem:[#allocation5 + $0x28] sm:$0xff] }
  0x3c   :  { %1389 = vmatprep.subr.bf16.mxu0 %v1388_v9  ;;  %v359_v20 = vld [vmem:[#allocation5 + $0x38] sm:$0xff]  ;;  %v1394_v21 = vpack.c.bf16 %v354_v18, %v352_v16  ;;  %v356_v23 = vld [vmem:[#allocation5 + $0x20] sm:$0xff]  ;;  %v358_v24 = vld [vmem:[#allocation5 + $0x30] sm:$0xff] }
  0x3d   :  { %v1396_v22 = vpack.c.bf16 %v359_v20, %v357_v19  ;;  %v361_v25 = vld [vmem:[#allocation5 + $0x48] sm:$0xff]  ;;  %1393 = vmatprep.subr.bf16.mxu1 %v1392_v17  ;;  %v363_v26 = vld [vmem:[#allocation5 + $0x58] sm:$0xff]  ;;  %v1398_v28 = vpack.c.bf16 %v358_v24, %v356_v23  ;;  %v360_v30 = vld [vmem:[#allocation5 + $0x40] sm:$0xff] }
  0x3e   :  { %v75_v27 = vld [vmem:[%s2088_s0 + $0x8] sm:$0xff]  ;;  %1395 = vmatpush1.bf16.msra.mxu1 %v1394_v21  ;;  %v1400_v29 = vpack.c.bf16 %v363_v26, %v361_v25  ;;  %v362_v31 = vld [vmem:[#allocation5 + $0x50] sm:$0xff]  ;;  %v367_v33 = vld [vmem:[#allocation5 + $0x78] sm:$0xff] }
  0x3f   :  { %1391 = vmatpush1.bf16.msra.mxu0 %v1390_v12  ;;  %1397 = vmatprep.subr.bf16.mxu1 %v1396_v22  ;;  %v365_v32 = vld [vmem:[#allocation5 + $0x68] sm:$0xff]  ;;  %v76_v34 = vld [vmem:[%s2088_s0 + $0x10] sm:$0xff]  ;;  %v1402_v35 = vpack.c.bf16 %v362_v31, %v360_v30  ;;  %v364_v37 = vld [vmem:[#allocation5 + $0x60] sm:$0xff] }
  0x40   :  { %v1404_v36 = vpack.c.bf16 %v367_v33, %v365_v32  ;;  %v366_v38 = vld [vmem:[#allocation5 + $0x70] sm:$0xff]  ;;  %v369_v39 = vld [vmem:[#allocation5 + $0x88] sm:$0xff]  ;;  %v371_v40 = vld [vmem:[#allocation5 + $0x98] sm:$0xff] }
  0x41   :  { %v77_v41 = vld [vmem:[%s2088_s0 + $0x18] sm:$0xff]  ;;  %v1406_v42 = vpack.c.bf16 %v366_v38, %v364_v37  ;;  %v1408_v43 = vpack.c.bf16 %v371_v40, %v369_v39  ;;  %v368_v44 = vld [vmem:[#allocation5 + $0x80] sm:$0xff]  ;;  %v370_v45 = vld [vmem:[#allocation5 + $0x90] sm:$0xff] }
  0x42   :  { %1146 = vmatmul.mubr.msk.f32.vlgmr.msra.gmra.mrb[0].mxu0 %vm110_vm0, %v74_v13  ;;  %1399 = vmatpush1.bf16.msra.mxu1 %v1398_v28  ;;  %v373_v46 = vld [vmem:[#allocation5 + $0xa8] sm:$0xff]  ;;  %v375_v47 = vld [vmem:[#allocation5 + $0xb8] sm:$0xff]  ;;  %v78_v48 = vld [vmem:[%s2088_s0 + $0x20] sm:$0xff]  ;;  %v1410_v49 = vpack.c.bf16 %v370_v45, %v368_v44 }
  0x43   :  { %229 = vmatprep.mubr.f32.mxu0 %v1666_v0  ;;  %1401 = vmatprep.subr.bf16.mxu1 %v1400_v29  ;;  %v1412_v50 = vpack.c.bf16 %v375_v47, %v373_v46  ;;  %v372_v51 = vld [vmem:[#allocation5 + $0xa0] sm:$0xff]  ;;  %v374_v52 = vld [vmem:[#allocation5 + $0xb0] sm:$0xff]  ;;  %v377_v53 = vld [vmem:[#allocation5 + $0xc8] sm:$0xff] }
  0x44   :  { %v379_v54 = vld [vmem:[#allocation5 + $0xd8] sm:$0xff]  ;;  %v79_v55 = vld [vmem:[%s2088_s0 + $0x28] sm:$0xff]  ;;  %v1414_v56 = vpack.c.bf16 %v374_v52, %v372_v51  ;;  %v376_v58 = vld [vmem:[#allocation5 + $0xc0] sm:$0xff] }
  0x45   :  { %v1416_v57 = vpack.c.bf16 %v379_v54, %v377_v53  ;;  %v378_v59 = vld [vmem:[#allocation5 + $0xd0] sm:$0xff]  ;;  %v381_v60 = vld [vmem:[#allocation5 + $0xe8] sm:$0xff]  ;;  %v383_v61 = vld [vmem:[#allocation5 + $0xf8] sm:$0xff] }
  0x46   :  { %1147 = vmatmul.mubr.msk.f32.gmra.mrb[2].mxu0 %vm110_vm0, %v75_v27  ;;  %1403 = vmatpush1.bf16.msra.mxu1 %v1402_v35  ;;  %v80_v62 = vld [vmem:[%s2088_s0 + $0x30] sm:$0xff]  ;;  %v1418_v63 = vpack.c.bf16 %v378_v59, %v376_v58  ;;  %v1420_v1 = vpack.c.bf16 %v383_v61, %v381_v60  ;;  %v380_v2 = vld [vmem:[#allocation5 + $0xe0] sm:$0xff]  ;;  %v385_v4 = vld [vmem:[#allocation5 + $0x108] sm:$0xff] }
  0x47   :  { %235 = vmatprep.mubr.f32.mxu0 %v1666_v0  ;;  %1405 = vmatprep.subr.bf16.mxu1 %v1404_v36  ;;  %v382_v3 = vld [vmem:[#allocation5 + $0xf0] sm:$0xff]  ;;  %v387_v5 = vld [vmem:[#allocation5 + $0x118] sm:$0xff]  ;;  %v384_v9 = vld [vmem:[#allocation5 + $0x100] sm:$0xff] }
  0x48   :  { %v81_v6 = vld [vmem:[%s2088_s0 + $0x38] sm:$0xff]  ;;  %v1422_v7 = vpack.c.bf16 %v382_v3, %v380_v2  ;;  %v1424_v8 = vpack.c.bf16 %v387_v5, %v385_v4  ;;  %v386_v10 = vld [vmem:[#allocation5 + $0x110] sm:$0xff]  ;;  %v389_v11 = vld [vmem:[#allocation5 + $0x128] sm:$0xff] }
  0x49   :  { %v391_v12 = vld [vmem:[#allocation5 + $0x138] sm:$0xff]  ;;  %v82_v13 = vld [vmem:[%s2088_s0 + $0x40] sm:$0xff]  ;;  %v1426_v14 = vpack.c.bf16 %v386_v10, %v384_v9  ;;  %v390_v17 = vld [vmem:[#allocation5 + $0x130] sm:$0xff] }
  0x4a   :  { %1148 = vmatmul.mubr.msk.f32.gmra.mrb[4].mxu0 %vm110_vm0, %v76_v34  ;;  %1407 = vmatpush1.bf16.msra.mxu1 %v1406_v42  ;;  %v1428_v15 = vpack.c.bf16 %v391_v12, %v389_v11  ;;  %v388_v16 = vld [vmem:[#allocation5 + $0x120] sm:$0xff]  ;;  %v393_v18 = vld [vmem:[#allocation5 + $0x148] sm:$0xff]  ;;  %v395_v19 = vld [vmem:[#allocation5 + $0x158] sm:$0xff] }
  0x4b   :  { %241 = vmatprep.mubr.f32.mxu0 %v1666_v0  ;;  %1409 = vmatprep.subr.bf16.mxu1 %v1408_v43  ;;  %v83_v20 = vld [vmem:[%s2088_s0 + $0x48] sm:$0xff]  ;;  %v1430_v21 = vpack.c.bf16 %v390_v17, %v388_v16  ;;  %v1432_v22 = vpack.c.bf16 %v395_v19, %v393_v18  ;;  %v392_v23 = vld [vmem:[#allocation5 + $0x140] sm:$0xff]  ;;  %v394_v24 = vld [vmem:[#allocation5 + $0x150] sm:$0xff] }
  0x4c   :  { %v397_v25 = vld [vmem:[#allocation5 + $0x168] sm:$0xff]  ;;  %v399_v26 = vld [vmem:[#allocation5 + $0x178] sm:$0xff]  ;;  %v84_v27 = vld [vmem:[%s2088_s0 + $0x50] sm:$0xff]  ;;  %v1434_v28 = vpack.c.bf16 %v394_v24, %v392_v23 }
  0x4d   :  { %v1436_v29 = vpack.c.bf16 %v399_v26, %v397_v25  ;;  %v396_v30 = vld [vmem:[#allocation5 + $0x160] sm:$0xff]  ;;  %v398_v31 = vld [vmem:[#allocation5 + $0x170] sm:$0xff]  ;;  %v401_v32 = vld [vmem:[#allocation5 + $0x188] sm:$0xff] }
  0x4e   :  { %1149 = vmatmul.mubr.msk.f32.gmra.mrb[6].mxu0 %vm110_vm0, %v77_v41  ;;  %1411 = vmatpush1.bf16.msra.mxu1 %v1410_v49  ;;  %v403_v33 = vld [vmem:[#allocation5 + $0x198] sm:$0xff]  ;;  %v1438_v35 = vpack.c.bf16 %v398_v31, %v396_v30  ;;  %v400_v37 = vld [vmem:[#allocation5 + $0x180] sm:$0xff]  ;;  %v402_v38 = vld [vmem:[#allocation5 + $0x190] sm:$0xff] }
  0x4f   :  { %247 = vmatprep.mubr.f32.mxu0 %v1666_v0  ;;  %1413 = vmatprep.subr.bf16.mxu1 %v1412_v50  ;;  %v85_v34 = vld [vmem:[%s2088_s0 + $0x58] sm:$0xff]  ;;  %v1440_v36 = vpack.c.bf16 %v403_v33, %v401_v32  ;;  %v405_v39 = vld [vmem:[#allocation5 + $0x1a8] sm:$0xff]  ;;  %v86_v41 = vld [vmem:[%s2088_s0 + $0x60] sm:$0xff]  ;;  %v1442_v42 = vpack.c.bf16 %v402_v38, %v400_v37  ;;  %v100_v37 = vlaneseq }
  0x50   :  { %v407_v40 = vld [vmem:[#allocation5 + $0x1b8] sm:$0xff]  ;;  %v404_v44 = vld [vmem:[#allocation5 + $0x1a0] sm:$0xff]  ;;  %v406_v45 = vld [vmem:[#allocation5 + $0x1b0] sm:$0xff] }
  0x51   :  { %v1444_v43 = vpack.c.bf16 %v407_v40, %v405_v39  ;;  %v409_v46 = vld [vmem:[#allocation5 + $0x1c8] sm:$0xff]  ;;  %v411_v47 = vld [vmem:[#allocation5 + $0x1d8] sm:$0xff]  ;;  %v1446_v49 = vpack.c.bf16 %v406_v45, %v404_v44  ;;  %v88_v51 = vld [vmem:[%s2088_s0 + $0x70] sm:$0xff]  ;;  %v1844_v38 = vshrl.u32 %v100_v37, 7 }
  0x52   :  { %1150 = vmatmul.mubr.msk.f32.gmra.mrb[8].mxu0 %vm110_vm0, %v78_v48  ;;  %1415 = vmatpush1.bf16.msra.mxu1 %v1414_v56  ;;  %v87_v48 = vld [vmem:[%s2088_s0 + $0x68] sm:$0xff]  ;;  %v1448_v50 = vpack.c.bf16 %v411_v47, %v409_v46  ;;  %v89_v52 = vld [vmem:[%s2088_s0 + $0x78] sm:$0xff]  ;;  %v408_v53 = vld [vmem:[#allocation5 + $0x1c0] sm:$0xff] }
  0x53   :  { %253 = vmatprep.mubr.f32.mxu0 %v1666_v0  ;;  %1417 = vmatprep.subr.bf16.mxu1 %v1416_v57  ;;  %v410_v54 = vld [vmem:[#allocation5 + $0x1d0] sm:$0xff]  ;;  %v413_v56 = vld [vmem:[#allocation5 + $0x1e8] sm:$0xff]  ;;  %v415_v57 = vld [vmem:[#allocation5 + $0x1f8] sm:$0xff]  ;;  %v102_v39 = vsub.s32 0, %v1844_v38 }
  0x54   :  { %v1452_v58 = vpack.c.bf16 %v415_v57, %v413_v56  ;;  %v412_v59 = vld [vmem:[#allocation5 + $0x1e0] sm:$0xff]  ;;  %v414_v60 = vld [vmem:[#allocation5 + $0x1f0] sm:$0xff]  ;;  %v622_v2 = vld [vmem:[#allocation7 + $0x8] sm:$0xff] }
  0x55   :  { %v1454_v61 = vpack.c.bf16 %v414_v60, %v412_v59  ;;  %v639_v3 = vld [vmem:[#allocation7 + $0x90] sm:$0xff]  ;;  %v640_v4 = vld [vmem:[#allocation7 + $0x98] sm:$0xff]  ;;  %v641_v9 = vld [vmem:[#allocation7 + $0xa0] sm:$0xff] }
  0x56   :  { %1151 = vmatmul.mubr.msk.f32.gmra.mrb[10].mxu0 %vm110_vm0, %v79_v55  ;;  %1419 = vmatpush1.bf16.msra.mxu1 %v1418_v63  ;;  %v1450_v55 = vpack.c.bf16 %v410_v54, %v408_v53  ;;  %v621_v63 = vld [vmem:[#allocation7] sm:$0xff]  ;;  %v642_v10 = vld [vmem:[#allocation7 + $0xa8] sm:$0xff]  ;;  %v644_v16 = vld [vmem:[#allocation7 + $0xb8] sm:$0xff] }
  0x57   :  { %259 = vmatprep.mubr.f32.mxu0 %v1666_v0  ;;  %1421 = vmatprep.subr.bf16.mxu1 %v1420_v1  ;;  %v1458_v5 = vpack.c.bf16 %v622_v2, %v621_v63  ;;  %v1464_v12 = vpack.c.bf16 %v642_v10, %v641_v9  ;;  %v627_v19 = vld [vmem:[#allocation7 + $0x30] sm:$0xff]  ;;  %v629_v25 = vld [vmem:[#allocation7 + $0x40] sm:$0xff]  ;;  %v630_v26 = vld [vmem:[#allocation7 + $0x48] sm:$0xff] }
  0x58   :  { %v631_v31 = vld [vmem:[#allocation7 + $0x50] sm:$0xff]  ;;  %v632_v32 = vld [vmem:[#allocation7 + $0x58] sm:$0xff]  ;;  %v649_v33 = vld [vmem:[#allocation7 + $0xe0] sm:$0xff] }
  0x59   :  { %v98_v40 = vld [vmem:[%s2090_s2] sm:$0x3] }
  0x5a   :  { %1152 = vmatmul.mubr.msk.f32.gmra.mrb[12].mxu0 %vm110_vm0, %v80_v62  ;;  %1423 = vmatpush1.bf16.msra.mxu1 %v1422_v7  ;;  %v637_v62 = vld [vmem:[#allocation7 + $0x80] sm:$0xff]  ;;  %v623_v7 = vld [vmem:[#allocation7 + $0x10] sm:$0xff] }
  0x5b   :  { %265 = vmatprep.mubr.f32.mxu0 %v1666_v0  ;;  %1425 = vmatprep.subr.bf16.mxu1 %v1424_v8  ;;  %v624_v8 = vld [vmem:[#allocation7 + $0x18] sm:$0xff] }
  0x5c   :  { %v1462_v11 = vpack.c.bf16 %v624_v8, %v623_v7 }
  0x5e   :  { %1153 = vmatmul.mubr.msk.f32.gmra.mrb[14].mxu0 %vm110_vm0, %v81_v6  ;;  %1427 = vmatpush1.bf16.msra.mxu1 %v1426_v14  ;;  %v1460_v6 = vpack.c.bf16 %v640_v4, %v639_v3  ;;  %v626_v14 = vld [vmem:[#allocation7 + $0x28] sm:$0xff] }
  0x5f   :  { %271 = vmatprep.mubr.f32.mxu0 %v1666_v0  ;;  %1429 = vmatprep.subr.bf16.mxu1 %v1428_v15  ;;  %v643_v15 = vld [vmem:[#allocation7 + $0xb0] sm:$0xff] }
  0x60   :  { %v1468_v18 = vpack.c.bf16 %v644_v16, %v643_v15 }
  0x62   :  { %1154 = vmatmul.mubr.msk.f32.gmra.mrb[16].mxu0 %vm110_vm0, %v82_v13  ;;  %1431 = vmatpush1.bf16.msra.mxu1 %v1430_v21  ;;  %v625_v13 = vld [vmem:[#allocation7 + $0x20] sm:$0xff] }
  0x63   :  { %277 = vmatprep.mubr.f32.mxu0 %v1666_v0  ;;  %1433 = vmatprep.subr.bf16.mxu1 %v1432_v22  ;;  %v1466_v17 = vpack.c.bf16 %v626_v14, %v625_v13  ;;  %v645_v21 = vld [vmem:[#allocation7 + $0xc0] sm:$0xff]  ;;  %v646_v22 = vld [vmem:[#allocation7 + $0xc8] sm:$0xff] }
  0x64   :  { %v1472_v24 = vpack.c.bf16 %v646_v22, %v645_v21 }
  0x66   :  { %1155 = vmatmul.mubr.msk.f32.gmra.mrb[18].mxu0 %vm110_vm0, %v83_v20  ;;  %1435 = vmatpush1.bf16.msra.mxu1 %v1434_v28  ;;  %v628_v20 = vld [vmem:[#allocation7 + $0x38] sm:$0xff] }
  0x67   :  { %283 = vmatprep.mubr.f32.mxu0 %v1666_v0  ;;  %1437 = vmatprep.subr.bf16.mxu1 %v1436_v29  ;;  %v1470_v23 = vpack.c.bf16 %v628_v20, %v627_v19  ;;  %v648_v28 = vld [vmem:[#allocation7 + $0xd8] sm:$0xff]  ;;  %v1474_v29 = vpack.c.bf16 %v630_v26, %v629_v25 }
  0x6a   :  { %1156 = vmatmul.mubr.msk.f32.gmra.mrb[20].mxu0 %vm110_vm0, %v84_v27  ;;  %1439 = vmatpush1.bf16.msra.mxu1 %v1438_v35  ;;  %v647_v27 = vld [vmem:[#allocation7 + $0xd0] sm:$0xff]  ;;  %v1478_v35 = vpack.c.bf16 %v632_v32, %v631_v31 }
  0x6b   :  { %289 = vmatprep.mubr.f32.mxu0 %v1666_v0  ;;  %1441 = vmatprep.subr.bf16.mxu1 %v1440_v36  ;;  %v1476_v30 = vpack.c.bf16 %v648_v28, %v647_v27 }
  0x6e   :  { %1157 = vmatmul.mubr.msk.f32.gmra.mrb[22].mxu0 %vm110_vm0, %v85_v34  ;;  %1443 = vmatpush1.bf16.msra.mxu1 %v1442_v42  ;;  %v650_v34 = vld [vmem:[#allocation7 + $0xe8] sm:$0xff]  ;;  %v1853_v42 = vrot.slane %v98_v40, %v102_v39 }
  0x6f   :  { %295 = vmatprep.mubr.f32.mxu0 %v1666_v0  ;;  %1445 = vmatprep.subr.bf16.mxu1 %v1444_v43  ;;  %v1480_v36 = vpack.c.bf16 %v650_v34, %v649_v33 }
  0x72   :  { %1158 = vmatmul.mubr.msk.f32.gmra.mrb[24].mxu0 %vm110_vm0, %v86_v41  ;;  %1447 = vmatpush1.bf16.msra.mxu1 %v1446_v49  ;;  %v106_v41 = vsub.s32 1, %v1844_v38 }
  0x73   :  { %301 = vmatprep.mubr.f32.mxu0 %v1666_v0  ;;  %1449 = vmatprep.subr.bf16.mxu1 %v1448_v50 }
  0x74   :  { %v1857_v43 = vrot.slane %v98_v40, %v106_v41 }
  0x76   :  { %1159 = vmatmul.mubr.msk.f32.gmra.mrb[26].mxu0 %vm110_vm0, %v87_v48  ;;  %1451 = vmatpush1.bf16.msra.mxu1 %v1450_v55 }
  0x77   :  { %307 = vmatprep.mubr.f32.mxu0 %v1666_v0  ;;  %1453 = vmatprep.subr.bf16.mxu1 %v1452_v58 }
  0x7a   :  { %1160 = vmatmul.mubr.msk.f32.gmra.mrb[28].mxu0 %vm110_vm0, %v88_v51  ;;  %1455 = vmatpush1.bf16.msra.mxu1 %v1454_v61 }
  0x7b   :  { %313 = vmatprep.mubr.f32.mxu0 %v1666_v0  ;;  %v638_v0 = vld [vmem:[#allocation7 + $0x88] sm:$0xff] }
  0x7c   :  { %v1456_v1 = vpack.c.bf16 %v638_v0, %v637_v62 }
  0x7e   :  { %1161 = vmatmul.mubr.msk.f32.gmra.mrb[30].mxu0 %vm110_vm0, %v89_v52  ;;  %1457 = vmatprep.subr.bf16.mxu0 %v1456_v1 }
  0x7f   :  { %1459 = vmatpush3.bf16.msra.mxu0 %v1458_v5 }
  0x80   :  { %1461 = vmatprep.subr.bf16.mxu0 %v1460_v6 }
  0x83   :  { %1463 = vmatpush3.bf16.msra.mxu0 %v1462_v11 }
  0x84   :  { %1465 = vmatprep.subr.bf16.mxu0 %v1464_v12 }
  0x87   :  { %1467 = vmatpush3.bf16.msra.mxu0 %v1466_v17 }
  0x88   :  { %1469 = vmatprep.subr.bf16.mxu0 %v1468_v18 }
  0x8b   :  { %1471 = vmatpush3.bf16.msra.mxu0 %v1470_v23 }
  0x8c   :  { %1473 = vmatprep.subr.bf16.mxu0 %v1472_v24 }
  0x8f   :  { %1475 = vmatpush3.bf16.msra.mxu0 %v1474_v29 }
  0x90   :  { %1477 = vmatprep.subr.bf16.mxu0 %v1476_v30 }
  0x93   :  { %1479 = vmatpush3.bf16.msra.mxu0 %v1478_v35 }
  0x94   :  { %1481 = vmatprep.subr.bf16.mxu0 %v1480_v36 }
 0x115   :  { %v225_v44 = vpop.f32.mrb[0].mxu0 }
 0x116   :  { %v226_v45 = vadd.f32 %v225_v44, %v1853_v42  ;;  %v227_v46 = vpop.f32.mrb[1].mxu0 }
 0x117   :  { %v228_v47 = vadd.f32 %v227_v46, %v1857_v43 }
 0x118   :  { %v320_v50 = vmax.f32 %v226_v45, 0.0 }
 0x119   :  { %v231_v48 = vpop.f32.mrb[2].mxu0  ;;  %v321_v49 = vmax.f32 %v228_v47, 0.0 }
 0x11a   :  { %v232_v51 = vadd.f32 %v231_v48, %v1853_v42  ;;  %v233_v52 = vpop.f32.mrb[3].mxu0 }
 0x11b   :  { %v234_v53 = vadd.f32 %v233_v52, %v1857_v43  ;;  %492 = vmatprep.mubr.f32.mxu1 %v321_v49 }
 0x11c   :  { %493 = vmatmul.mubr.f32.vlgmr.msra.gmra.mrb[0].mxu1 %v320_v50  ;;  %v322_v56 = vmax.f32 %v232_v51, 0.0 }
 0x11d   :  { %v323_v54 = vmax.f32 %v234_v53, 0.0  ;;  %v237_v55 = vpop.f32.mrb[4].mxu0 }
 0x11e   :  { %v238_v57 = vadd.f32 %v237_v55, %v1853_v42  ;;  %v239_v58 = vpop.f32.mrb[5].mxu0 }
 0x11f   :  { %v240_v59 = vadd.f32 %v239_v58, %v1857_v43  ;;  %498 = vmatprep.mubr.f32.mxu1 %v323_v54 }
 0x120   :  { %499 = vmatmul.mubr.f32.gmra.mrb[2].mxu1 %v322_v56  ;;  %v324_v62 = vmax.f32 %v238_v57, 0.0 }
 0x121   :  { %v325_v60 = vmax.f32 %v240_v59, 0.0  ;;  %v243_v61 = vpop.f32.mrb[6].mxu0 }
 0x122   :  { %v244_v0 = vadd.f32 %v243_v61, %v1853_v42  ;;  %v245_v63 = vpop.f32.mrb[7].mxu0 }
 0x123   :  { %v246_v1 = vadd.f32 %v245_v63, %v1857_v43  ;;  %504 = vmatprep.mubr.f32.mxu1 %v325_v60 }
 0x124   :  { %505 = vmatmul.mubr.f32.gmra.mrb[4].mxu1 %v324_v62  ;;  %v326_v4 = vmax.f32 %v244_v0, 0.0 }
 0x125   :  { %v327_v2 = vmax.f32 %v246_v1, 0.0  ;;  %v249_v3 = vpop.f32.mrb[8].mxu0 }
 0x126   :  { %v250_v5 = vadd.f32 %v249_v3, %v1853_v42  ;;  %v251_v6 = vpop.f32.mrb[9].mxu0 }
 0x127   :  { %v252_v7 = vadd.f32 %v251_v6, %v1857_v43  ;;  %510 = vmatprep.mubr.f32.mxu1 %v327_v2 }
 0x128   :  { %511 = vmatmul.mubr.f32.gmra.mrb[6].mxu1 %v326_v4  ;;  %v328_v10 = vmax.f32 %v250_v5, 0.0 }
 0x129   :  { %v329_v8 = vmax.f32 %v252_v7, 0.0  ;;  %v255_v9 = vpop.f32.mrb[10].mxu0 }
 0x12a   :  { %v256_v11 = vadd.f32 %v255_v9, %v1853_v42  ;;  %v257_v12 = vpop.f32.mrb[11].mxu0 }
 0x12b   :  { %v258_v13 = vadd.f32 %v257_v12, %v1857_v43  ;;  %516 = vmatprep.mubr.f32.mxu1 %v329_v8 }
 0x12c   :  { %517 = vmatmul.mubr.f32.gmra.mrb[8].mxu1 %v328_v10  ;;  %v330_v16 = vmax.f32 %v256_v11, 0.0 }
 0x12d   :  { %v331_v14 = vmax.f32 %v258_v13, 0.0  ;;  %v261_v15 = vpop.f32.mrb[12].mxu0 }
 0x12e   :  { %v262_v17 = vadd.f32 %v261_v15, %v1853_v42  ;;  %v263_v18 = vpop.f32.mrb[13].mxu0 }
 0x12f   :  { %v264_v19 = vadd.f32 %v263_v18, %v1857_v43  ;;  %522 = vmatprep.mubr.f32.mxu1 %v331_v14  ;;  %v634_v18 = vld [vmem:[#allocation7 + $0x68] sm:$0xff] }
 0x130   :  { %523 = vmatmul.mubr.f32.gmra.mrb[10].mxu1 %v330_v16  ;;  %v332_v22 = vmax.f32 %v262_v17, 0.0  ;;  %v633_v17 = vld [vmem:[#allocation7 + $0x60] sm:$0xff] }
 0x131   :  { %v333_v20 = vmax.f32 %v264_v19, 0.0  ;;  %v267_v21 = vpop.f32.mrb[14].mxu0  ;;  %v1482_v19 = vpack.c.bf16 %v634_v18, %v633_v17 }
 0x132   :  { %v268_v23 = vadd.f32 %v267_v21, %v1853_v42  ;;  %v269_v24 = vpop.f32.mrb[15].mxu0  ;;  %v652_v21 = vld [vmem:[#allocation7 + $0xf8] sm:$0xff] }
 0x133   :  { %v270_v25 = vadd.f32 %v269_v24, %v1857_v43  ;;  %528 = vmatprep.mubr.f32.mxu1 %v333_v20  ;;  %1483 = vmatpush3.bf16.msra.mxu0 %v1482_v19  ;;  %v651_v20 = vld [vmem:[#allocation7 + $0xf0] sm:$0xff]  ;;  %v636_v24 = vld [vmem:[#allocation7 + $0x78] sm:$0xff] }
 0x134   :  { %529 = vmatmul.mubr.f32.gmra.mrb[12].mxu1 %v332_v22  ;;  %v334_v28 = vmax.f32 %v268_v23, 0.0  ;;  %v1484_v22 = vpack.c.bf16 %v652_v21, %v651_v20  ;;  %v635_v23 = vld [vmem:[#allocation7 + $0x70] sm:$0xff] }
 0x135   :  { %v335_v26 = vmax.f32 %v270_v25, 0.0  ;;  %v273_v27 = vpop.f32.mrb[16].mxu0  ;;  %v1486_v25 = vpack.c.bf16 %v636_v24, %v635_v23 }
 0x136   :  { %v274_v29 = vadd.f32 %v273_v27, %v1853_v42  ;;  %v275_v30 = vpop.f32.mrb[17].mxu0  ;;  %1485 = vmatprep.subr.bf16.mxu0 %v1484_v22 }
 0x137   :  { %v276_v31 = vadd.f32 %v275_v30, %v1857_v43  ;;  %534 = vmatprep.mubr.f32.mxu1 %v335_v26  ;;  %1487 = vmatpush3.bf16.msra.mxu0 %v1486_v25 }
 0x138   :  { %535 = vmatmul.mubr.f32.gmra.mrb[14].mxu1 %v334_v28  ;;  %v336_v34 = vmax.f32 %v274_v29, 0.0 }
 0x139   :  { %v337_v32 = vmax.f32 %v276_v31, 0.0  ;;  %v279_v33 = vpop.f32.mrb[18].mxu0 }
 0x13a   :  { %v280_v35 = vadd.f32 %v279_v33, %v1853_v42  ;;  %v281_v36 = vpop.f32.mrb[19].mxu0 }
 0x13b   :  { %v282_v37 = vadd.f32 %v281_v36, %v1857_v43  ;;  %540 = vmatprep.mubr.f32.mxu1 %v337_v32 }
 0x13c   :  { %541 = vmatmul.mubr.f32.gmra.mrb[16].mxu1 %v336_v34  ;;  %v338_v45 = vmax.f32 %v280_v35, 0.0 }
 0x13d   :  { %v339_v40 = vmax.f32 %v282_v37, 0.0  ;;  %v285_v44 = vpop.f32.mrb[20].mxu0 }
 0x13e   :  { %v286_v46 = vadd.f32 %v285_v44, %v1853_v42  ;;  %v287_v47 = vpop.f32.mrb[21].mxu0 }
 0x13f   :  { %v288_v48 = vadd.f32 %v287_v47, %v1857_v43  ;;  %546 = vmatprep.mubr.f32.mxu1 %v339_v40 }
 0x140   :  { %547 = vmatmul.mubr.f32.gmra.mrb[18].mxu1 %v338_v45  ;;  %v340_v51 = vmax.f32 %v286_v46, 0.0 }
 0x141   :  { %v341_v49 = vmax.f32 %v288_v48, 0.0  ;;  %v291_v50 = vpop.f32.mrb[22].mxu0 }
 0x142   :  { %v292_v52 = vadd.f32 %v291_v50, %v1853_v42  ;;  %v293_v53 = vpop.f32.mrb[23].mxu0 }
 0x143   :  { %v294_v54 = vadd.f32 %v293_v53, %v1857_v43  ;;  %552 = vmatprep.mubr.f32.mxu1 %v341_v49 }
 0x144   :  { %553 = vmatmul.mubr.f32.gmra.mrb[20].mxu1 %v340_v51  ;;  %v342_v57 = vmax.f32 %v292_v52, 0.0 }
 0x145   :  { %v343_v55 = vmax.f32 %v294_v54, 0.0  ;;  %v297_v56 = vpop.f32.mrb[24].mxu0 }
 0x146   :  { %v298_v58 = vadd.f32 %v297_v56, %v1853_v42  ;;  %v299_v59 = vpop.f32.mrb[25].mxu0 }
 0x147   :  { %v300_v60 = vadd.f32 %v299_v59, %v1857_v43  ;;  %558 = vmatprep.mubr.f32.mxu1 %v343_v55 }
 0x148   :  { %559 = vmatmul.mubr.f32.gmra.mrb[22].mxu1 %v342_v57  ;;  %v344_v0 = vmax.f32 %v298_v58, 0.0 }
 0x149   :  { %v345_v61 = vmax.f32 %v300_v60, 0.0  ;;  %v303_v62 = vpop.f32.mrb[26].mxu0 }
 0x14a   :  { %v304_v63 = vadd.f32 %v303_v62, %v1853_v42  ;;  %v305_v1 = vpop.f32.mrb[27].mxu0 }
 0x14b   :  { %v306_v2 = vadd.f32 %v305_v1, %v1857_v43  ;;  %564 = vmatprep.mubr.f32.mxu1 %v345_v61 }
 0x14c   :  { %565 = vmatmul.mubr.f32.gmra.mrb[24].mxu1 %v344_v0  ;;  %v346_v5 = vmax.f32 %v304_v63, 0.0 }
 0x14d   :  { %v347_v3 = vmax.f32 %v306_v2, 0.0  ;;  %v309_v4 = vpop.f32.mrb[28].mxu0 }
 0x14e   :  { %v310_v6 = vadd.f32 %v309_v4, %v1853_v42  ;;  %v311_v7 = vpop.f32.mrb[29].mxu0 }
 0x14f   :  { %v312_v8 = vadd.f32 %v311_v7, %v1857_v43  ;;  %570 = vmatprep.mubr.f32.mxu1 %v347_v3 }
 0x150   :  { %571 = vmatmul.mubr.f32.gmra.mrb[26].mxu1 %v346_v5  ;;  %v348_v11 = vmax.f32 %v310_v6, 0.0 }
 0x151   :  { %v349_v9 = vmax.f32 %v312_v8, 0.0  ;;  %v315_v10 = vpop.f32.mrb[30].mxu0 }
 0x152   :  { %v316_v12 = vadd.f32 %v315_v10, %v1853_v42  ;;  %v317_v13 = vpop.f32.mrb[31].mxu0  ;;  %v416_v42 = vld [vmem:[%s2092_s4] sm:$0x3] }
 0x153   :  { %v318_v14 = vadd.f32 %v317_v13, %v1857_v43  ;;  %576 = vmatprep.mubr.f32.mxu1 %v349_v9  ;;  %v1896_v43 = vrot.slane %v416_v42, %v102_v39  ;;  %v1900_v26 = vrot.slane %v416_v42, %v106_v41 }
 0x154   :  { %577 = vmatmul.mubr.f32.gmra.mrb[28].mxu1 %v348_v11  ;;  %v350_v16 = vmax.f32 %v316_v12, 0.0 }
 0x155   :  { %v351_v15 = vmax.f32 %v318_v14, 0.0 }
 0x157   :  { %582 = vmatprep.mubr.f32.mxu1 %v351_v15 }
 0x158   :  { %583 = vmatmul.mubr.f32.gmra.mrb[30].mxu1 %v350_v16 }
 0x1ef   :  { %v494_v27 = vpop.f32.mrb[0].mxu1 }
 0x1f0   :  { %v495_v28 = vadd.f32 %v494_v27, %v1896_v43  ;;  %v496_v29 = vpop.f32.mrb[1].mxu1 }
 0x1f1   :  { %v497_v30 = vadd.f32 %v496_v29, %v1900_v26 }
 0x1f2   :  { %v589_v33 = vmax.f32 %v495_v28, 0.0 }
 0x1f3   :  { %v590_v31 = vmax.f32 %v497_v30, 0.0  ;;  %v500_v32 = vpop.f32.mrb[2].mxu1 }
 0x1f4   :  { %v501_v34 = vadd.f32 %v500_v32, %v1896_v43  ;;  %v502_v35 = vpop.f32.mrb[3].mxu1 }
 0x1f5   :  { %v503_v36 = vadd.f32 %v502_v35, %v1900_v26  ;;  %724 = vmatprep.mubr.f32.mxu0 %v590_v31 }
 0x1f6   :  { %725 = vmatmul.mubr.f32.vlgmr.msra.gmra.mrb[32].mxu0 %v589_v33  ;;  %v591_v41 = vmax.f32 %v501_v34, 0.0 }
 0x1f7   :  { %v592_v39 = vmax.f32 %v503_v36, 0.0  ;;  %v506_v38 = vpop.f32.mrb[4].mxu1 }
 0x1f8   :  { %v507_v37 = vadd.f32 %v506_v38, %v1896_v43  ;;  %v508_v40 = vpop.f32.mrb[5].mxu1 }
 0x1f9   :  { %v509_v44 = vadd.f32 %v508_v40, %v1900_v26  ;;  %729 = vmatprep.mubr.f32.mxu0 %v592_v39 }
 0x1fa   :  { %730 = vmatmul.mubr.f32.gmra.mrb[34].mxu0 %v591_v41  ;;  %v593_v47 = vmax.f32 %v507_v37, 0.0 }
 0x1fb   :  { %v594_v45 = vmax.f32 %v509_v44, 0.0  ;;  %v512_v46 = vpop.f32.mrb[6].mxu1 }
 0x1fc   :  { %v513_v48 = vadd.f32 %v512_v46, %v1896_v43  ;;  %v514_v49 = vpop.f32.mrb[7].mxu1 }
 0x1fd   :  { %v515_v50 = vadd.f32 %v514_v49, %v1900_v26  ;;  %734 = vmatprep.mubr.f32.mxu0 %v594_v45 }
 0x1fe   :  { %735 = vmatmul.mubr.f32.gmra.mrb[36].mxu0 %v593_v47  ;;  %v595_v53 = vmax.f32 %v513_v48, 0.0 }
 0x1ff   :  { %v596_v51 = vmax.f32 %v515_v50, 0.0  ;;  %v518_v52 = vpop.f32.mrb[8].mxu1 }
 0x200   :  { %v519_v54 = vadd.f32 %v518_v52, %v1896_v43  ;;  %v520_v55 = vpop.f32.mrb[9].mxu1 }
 0x201   :  { %v521_v56 = vadd.f32 %v520_v55, %v1900_v26  ;;  %739 = vmatprep.mubr.f32.mxu0 %v596_v51 }
 0x202   :  { %740 = vmatmul.mubr.f32.gmra.mrb[38].mxu0 %v595_v53  ;;  %v597_v59 = vmax.f32 %v519_v54, 0.0 }
 0x203   :  { %v598_v57 = vmax.f32 %v521_v56, 0.0  ;;  %v524_v58 = vpop.f32.mrb[10].mxu1 }
 0x204   :  { %v525_v60 = vadd.f32 %v524_v58, %v1896_v43  ;;  %v526_v61 = vpop.f32.mrb[11].mxu1 }
 0x205   :  { %v527_v62 = vadd.f32 %v526_v61, %v1900_v26  ;;  %744 = vmatprep.mubr.f32.mxu0 %v598_v57 }
 0x206   :  { %745 = vmatmul.mubr.f32.gmra.mrb[40].mxu0 %v597_v59  ;;  %v599_v1 = vmax.f32 %v525_v60, 0.0 }
 0x207   :  { %v600_v0 = vmax.f32 %v527_v62, 0.0  ;;  %v530_v63 = vpop.f32.mrb[12].mxu1 }
 0x208   :  { %v531_v2 = vadd.f32 %v530_v63, %v1896_v43  ;;  %v532_v3 = vpop.f32.mrb[13].mxu1 }
 0x209   :  { %v533_v4 = vadd.f32 %v532_v3, %v1900_v26  ;;  %749 = vmatprep.mubr.f32.mxu0 %v600_v0 }
 0x20a   :  { %750 = vmatmul.mubr.f32.gmra.mrb[42].mxu0 %v599_v1  ;;  %v601_v7 = vmax.f32 %v531_v2, 0.0  ;;  %v1937_v1 = vld [vmem:[%s2094_s6] ss:$0 sm:$0xff] }
 0x20b   :  { %v602_v5 = vmax.f32 %v533_v4, 0.0  ;;  %v536_v6 = vpop.f32.mrb[14].mxu1 }
 0x20c   :  { %v537_v8 = vadd.f32 %v536_v6, %v1896_v43  ;;  %v538_v9 = vpop.f32.mrb[15].mxu1 }
 0x20d   :  { %v539_v10 = vadd.f32 %v538_v9, %v1900_v26  ;;  %754 = vmatprep.mubr.f32.mxu0 %v602_v5 }
 0x20e   :  { %755 = vmatmul.mubr.f32.gmra.mrb[44].mxu0 %v601_v7  ;;  %v603_v13 = vmax.f32 %v537_v8, 0.0 }
 0x20f   :  { %v604_v11 = vmax.f32 %v539_v10, 0.0  ;;  %v542_v12 = vpop.f32.mrb[16].mxu1 }
 0x210   :  { %v543_v14 = vadd.f32 %v542_v12, %v1896_v43  ;;  %v544_v15 = vpop.f32.mrb[17].mxu1 }
 0x211   :  { %v545_v16 = vadd.f32 %v544_v15, %v1900_v26  ;;  %759 = vmatprep.mubr.f32.mxu0 %v604_v11 }
 0x212   :  { %760 = vmatmul.mubr.f32.gmra.mrb[46].mxu0 %v603_v13  ;;  %v605_v19 = vmax.f32 %v543_v14, 0.0 }
 0x213   :  { %v606_v17 = vmax.f32 %v545_v16, 0.0  ;;  %v548_v18 = vpop.f32.mrb[18].mxu1 }
 0x214   :  { %v549_v20 = vadd.f32 %v548_v18, %v1896_v43  ;;  %v550_v21 = vpop.f32.mrb[19].mxu1 }
 0x215   :  { %v551_v22 = vadd.f32 %v550_v21, %v1900_v26  ;;  %764 = vmatprep.mubr.f32.mxu0 %v606_v17 }
 0x216   :  { %765 = vmatmul.mubr.f32.gmra.mrb[48].mxu0 %v605_v19  ;;  %v607_v25 = vmax.f32 %v549_v20, 0.0 }
 0x217   :  { %v608_v23 = vmax.f32 %v551_v22, 0.0  ;;  %v554_v24 = vpop.f32.mrb[20].mxu1 }
 0x218   :  { %v555_v42 = vadd.f32 %v554_v24, %v1896_v43  ;;  %v556_v27 = vpop.f32.mrb[21].mxu1 }
 0x219   :  { %v557_v28 = vadd.f32 %v556_v27, %v1900_v26  ;;  %769 = vmatprep.mubr.f32.mxu0 %v608_v23 }
 0x21a   :  { %770 = vmatmul.mubr.f32.gmra.mrb[50].mxu0 %v607_v25  ;;  %v609_v31 = vmax.f32 %v555_v42, 0.0 }
 0x21b   :  { %v610_v29 = vmax.f32 %v557_v28, 0.0  ;;  %v560_v30 = vpop.f32.mrb[22].mxu1 }
 0x21c   :  { %v561_v32 = vadd.f32 %v560_v30, %v1896_v43  ;;  %v562_v33 = vpop.f32.mrb[23].mxu1 }
 0x21d   :  { %v563_v34 = vadd.f32 %v562_v33, %v1900_v26  ;;  %774 = vmatprep.mubr.f32.mxu0 %v610_v29 }
 0x21e   :  { %775 = vmatmul.mubr.f32.gmra.mrb[52].mxu0 %v609_v31  ;;  %v611_v39 = vmax.f32 %v561_v32, 0.0 }
 0x21f   :  { %v612_v35 = vmax.f32 %v563_v34, 0.0  ;;  %v566_v36 = vpop.f32.mrb[24].mxu1 }
 0x220   :  { %v567_v38 = vadd.f32 %v566_v36, %v1896_v43  ;;  %v568_v41 = vpop.f32.mrb[25].mxu1 }
 0x221   :  { %v569_v37 = vadd.f32 %v568_v41, %v1900_v26  ;;  %779 = vmatprep.mubr.f32.mxu0 %v612_v35 }
 0x222   :  { %780 = vmatmul.mubr.f32.gmra.mrb[54].mxu0 %v611_v39  ;;  %v613_v45 = vmax.f32 %v567_v38, 0.0 }
 0x223   :  { %v614_v40 = vmax.f32 %v569_v37, 0.0  ;;  %v572_v44 = vpop.f32.mrb[26].mxu1 }
 0x224   :  { %v573_v46 = vadd.f32 %v572_v44, %v1896_v43  ;;  %v574_v47 = vpop.f32.mrb[27].mxu1 }
 0x225   :  { %v575_v48 = vadd.f32 %v574_v47, %v1900_v26  ;;  %784 = vmatprep.mubr.f32.mxu0 %v614_v40 }
 0x226   :  { %785 = vmatmul.mubr.f32.gmra.mrb[56].mxu0 %v613_v45  ;;  %v615_v51 = vmax.f32 %v573_v46, 0.0 }
 0x227   :  { %v616_v49 = vmax.f32 %v575_v48, 0.0  ;;  %v578_v50 = vpop.f32.mrb[28].mxu1 }
 0x228   :  { %v579_v52 = vadd.f32 %v578_v50, %v1896_v43  ;;  %v580_v53 = vpop.f32.mrb[29].mxu1 }
 0x229   :  { %v581_v54 = vadd.f32 %v580_v53, %v1900_v26  ;;  %789 = vmatprep.mubr.f32.mxu0 %v616_v49 }
 0x22a   :  { %790 = vmatmul.mubr.f32.gmra.mrb[58].mxu0 %v615_v51  ;;  %v617_v57 = vmax.f32 %v579_v52, 0.0 }
 0x22b   :  { %v618_v55 = vmax.f32 %v581_v54, 0.0  ;;  %v584_v56 = vpop.f32.mrb[30].mxu1 }
 0x22c   :  { %v585_v58 = vadd.f32 %v584_v56, %v1896_v43  ;;  %v586_v59 = vpop.f32.mrb[31].mxu1 }
 0x22d   :  { %v587_v60 = vadd.f32 %v586_v59, %v1900_v26  ;;  %794 = vmatprep.mubr.f32.mxu0 %v618_v55 }
 0x22e   :  { %795 = vmatmul.mubr.f32.gmra.mrb[60].mxu0 %v617_v57  ;;  %v619_v62 = vmax.f32 %v585_v58, 0.0 }
 0x22f   :  { %v620_v61 = vmax.f32 %v587_v60, 0.0 }
 0x231   :  { %799 = vmatprep.mubr.f32.mxu0 %v620_v61 }
 0x232   :  { %800 = vmatmul.mubr.f32.gmra.mrb[62].mxu0 %v619_v62 }
 0x2c9   :  { %v1195_v0 = vpop.f32.mrb[32].mxu0 }
 0x2ca   :  { %v1196_v63 = vpop.f32.mrb[33].mxu0 }
 0x2cb   :  { %v1197_v2 = vadd.f32 %v1196_v63, %v1195_v0  ;;  %v837_v63 = vld [vmem:[%s2095_s7] sm:$0xff] }
 0x2cc   :  { %1325 = vmatprep.mubr.f32.mxu1 %v837_v63 }
 0x2cd   :  { %v1198_v3 = vpop.f32.mrb[34].mxu0  ;;  %v727_v43 = vadd.f32 %v1197_v2, %v1937_v1 }
 0x2ce   :  { %v1199_v4 = vpop.f32.mrb[35].mxu0 }
 0x2cf   :  { %v1200_v5 = vadd.f32 %v1199_v4, %v1198_v3  ;;  %805 = vxpose.xlu0.b32.start [1/16] %v727_v43, 128 }
 0x2d1   :  { %v1201_v26 = vpop.f32.mrb[36].mxu0  ;;  %v732_v6 = vadd.f32 %v1200_v5, %v1937_v1 }
 0x2d2   :  { %v1202_v7 = vpop.f32.mrb[37].mxu0 }
 0x2d3   :  { %v1203_v8 = vadd.f32 %v1202_v7, %v1201_v26  ;;  %806 = vxpose.xlu0.b32.cont [2/16] %v732_v6, 128 }
 0x2d5   :  { %v1204_v9 = vpop.f32.mrb[38].mxu0  ;;  %v737_v10 = vadd.f32 %v1203_v8, %v1937_v1 }
 0x2d6   :  { %v1205_v11 = vpop.f32.mrb[39].mxu0 }
 0x2d7   :  { %v1206_v12 = vadd.f32 %v1205_v11, %v1204_v9  ;;  %807 = vxpose.xlu0.b32.cont [3/16] %v737_v10, 128 }
 0x2d9   :  { %v1207_v13 = vpop.f32.mrb[40].mxu0  ;;  %v742_v14 = vadd.f32 %v1206_v12, %v1937_v1 }
 0x2da   :  { %v1208_v15 = vpop.f32.mrb[41].mxu0 }
 0x2db   :  { %v1209_v16 = vadd.f32 %v1208_v15, %v1207_v13  ;;  %808 = vxpose.xlu0.b32.cont [4/16] %v742_v14, 128 }
 0x2dd   :  { %v1210_v17 = vpop.f32.mrb[42].mxu0  ;;  %v747_v18 = vadd.f32 %v1209_v16, %v1937_v1 }
 0x2de   :  { %v1211_v19 = vpop.f32.mrb[43].mxu0 }
 0x2df   :  { %v1212_v20 = vadd.f32 %v1211_v19, %v1210_v17  ;;  %809 = vxpose.xlu0.b32.cont [5/16] %v747_v18, 128 }
 0x2e1   :  { %v1213_v21 = vpop.f32.mrb[44].mxu0  ;;  %v752_v22 = vadd.f32 %v1212_v20, %v1937_v1 }
 0x2e2   :  { %v1214_v23 = vpop.f32.mrb[45].mxu0 }
 0x2e3   :  { %v1215_v24 = vadd.f32 %v1214_v23, %v1213_v21  ;;  %810 = vxpose.xlu0.b32.cont [6/16] %v752_v22, 128  ;;  %v838_v23 = vld [vmem:[%s2095_s7 + $0x8] sm:$0xff] }
 0x2e5   :  { %v1216_v25 = vpop.f32.mrb[46].mxu0  ;;  %v757_v42 = vadd.f32 %v1215_v24, %v1937_v1  ;;  %v839_v24 = vld [vmem:[%s2095_s7 + $0x10] sm:$0xff] }
 0x2e6   :  { %v1217_v27 = vpop.f32.mrb[47].mxu0 }
 0x2e7   :  { %v1218_v28 = vadd.f32 %v1217_v27, %v1216_v25  ;;  %811 = vxpose.xlu0.b32.cont [7/16] %v757_v42, 128  ;;  %v840_v25 = vld [vmem:[%s2095_s7 + $0x18] sm:$0xff]  ;;  %v841_v42 = vld [vmem:[%s2095_s7 + $0x20] sm:$0xff]  ;;  %v842_v27 = vld [vmem:[%s2095_s7 + $0x28] sm:$0xff] }
 0x2e9   :  { %v1219_v29 = vpop.f32.mrb[48].mxu0  ;;  %v762_v30 = vadd.f32 %v1218_v28, %v1937_v1  ;;  %v843_v28 = vld [vmem:[%s2095_s7 + $0x30] sm:$0xff] }
 0x2ea   :  { %v1220_v31 = vpop.f32.mrb[49].mxu0 }
 0x2eb   :  { %v1221_v32 = vadd.f32 %v1220_v31, %v1219_v29  ;;  %812 = vxpose.xlu0.b32.cont [8/16] %v762_v30, 128  ;;  %v844_v29 = vld [vmem:[%s2095_s7 + $0x38] sm:$0xff]  ;;  %v845_v30 = vld [vmem:[%s2095_s7 + $0x40] sm:$0xff]  ;;  %v846_v31 = vld [vmem:[%s2095_s7 + $0x48] sm:$0xff] }
 0x2ed   :  { %v1222_v33 = vpop.f32.mrb[50].mxu0  ;;  %v767_v34 = vadd.f32 %v1221_v32, %v1937_v1  ;;  %v847_v32 = vld [vmem:[%s2095_s7 + $0x50] sm:$0xff] }
 0x2ee   :  { %v1223_v35 = vpop.f32.mrb[51].mxu0 }
 0x2ef   :  { %v1224_v36 = vadd.f32 %v1223_v35, %v1222_v33  ;;  %813 = vxpose.xlu0.b32.cont [9/16] %v767_v34, 128  ;;  %v848_v33 = vld [vmem:[%s2095_s7 + $0x58] sm:$0xff]  ;;  %v849_v34 = vld [vmem:[%s2095_s7 + $0x60] sm:$0xff]  ;;  %v850_v35 = vld [vmem:[%s2095_s7 + $0x68] sm:$0xff] }
 0x2f1   :  { %v1225_v39 = vpop.f32.mrb[52].mxu0  ;;  %v772_v38 = vadd.f32 %v1224_v36, %v1937_v1  ;;  %v851_v36 = vld [vmem:[%s2095_s7 + $0x70] sm:$0xff] }
 0x2f2   :  { %v1226_v41 = vpop.f32.mrb[53].mxu0 }
 0x2f3   :  { %v1227_v37 = vadd.f32 %v1226_v41, %v1225_v39  ;;  %814 = vxpose.xlu0.b32.cont [10/16] %v772_v38, 128  ;;  %v852_v39 = vld [vmem:[%s2095_s7 + $0x78] sm:$0xff]  ;;  %v1014_v38 = vld [vmem:[%s2096_s8] sm:$0xff] }
 0x2f4   :  { %1381 = vmatprep.mubr.f32.mxu0 %v1014_v38 }
 0x2f5   :  { %v1228_v40 = vpop.f32.mrb[54].mxu0  ;;  %v777_v44 = vadd.f32 %v1227_v37, %v1937_v1 }
 0x2f6   :  { %v1229_v45 = vpop.f32.mrb[55].mxu0 }
 0x2f7   :  { %v1230_v46 = vadd.f32 %v1229_v45, %v1228_v40  ;;  %815 = vxpose.xlu0.b32.cont [11/16] %v777_v44, 128 }
 0x2f9   :  { %v1231_v47 = vpop.f32.mrb[56].mxu0  ;;  %v782_v48 = vadd.f32 %v1230_v46, %v1937_v1 }
 0x2fa   :  { %v1232_v49 = vpop.f32.mrb[57].mxu0 }
 0x2fb   :  { %v1233_v50 = vadd.f32 %v1232_v49, %v1231_v47  ;;  %816 = vxpose.xlu0.b32.cont [12/16] %v782_v48, 128 }
 0x2fd   :  { %v1234_v51 = vpop.f32.mrb[58].mxu0  ;;  %v787_v52 = vadd.f32 %v1233_v50, %v1937_v1 }
 0x2fe   :  { %v1235_v53 = vpop.f32.mrb[59].mxu0 }
 0x2ff   :  { %v1236_v54 = vadd.f32 %v1235_v53, %v1234_v51  ;;  %817 = vxpose.xlu0.b32.cont [13/16] %v787_v52, 128 }
 0x301   :  { %v1237_v55 = vpop.f32.mrb[60].mxu0  ;;  %v792_v56 = vadd.f32 %v1236_v54, %v1937_v1 }
 0x302   :  { %v1238_v57 = vpop.f32.mrb[61].mxu0 }
 0x303   :  { %v1239_v58 = vadd.f32 %v1238_v57, %v1237_v55  ;;  %818 = vxpose.xlu0.b32.cont [14/16] %v792_v56, 128 }
 0x305   :  { %v1240_v59 = vpop.f32.mrb[62].mxu0  ;;  %v797_v60 = vadd.f32 %v1239_v58, %v1937_v1 }
 0x306   :  { %v1241_v61 = vpop.f32.mrb[63].mxu0 }
 0x307   :  { %v1242_v62 = vadd.f32 %v1241_v61, %v1240_v59  ;;  %819 = vxpose.xlu0.b32.cont [15/16] %v797_v60, 128 }
 0x309   :  { %v802_v0 = vadd.f32 %v1242_v62, %v1937_v1 }
 0x30b   :  { %820 = vxpose.xlu0.b32.end [16/16] %v802_v0, 128 }
 0x34f   :  { %v1958_v2 = vpop.trf.xlu0 }
 0x353   :  { %v1960_v3 = vpop.trf.xlu0 }
 0x354   :  { %v1488_v43 = vpack.c.bf16 %v1960_v3, %v1958_v2 }
 0x356   :  { %1489 = vmatprep.subr.bf16.mxu1 %v1488_v43 }
 0x357   :  { %v1964_v4 = vpop.trf.xlu0  ;;  %1491 = vmatpush3.bf16.msra.mxu1 %v1488_v43 }
 0x35b   :  { %v1966_v5 = vpop.trf.xlu0 }
 0x35c   :  { %v1492_v1 = vpack.c.bf16 %v1966_v5, %v1964_v4 }
 0x35e   :  { %1493 = vmatprep.subr.bf16.mxu1 %v1492_v1 }
 0x35f   :  { %v1970_v26 = vpop.trf.xlu0  ;;  %1495 = vmatpush3.bf16.msra.mxu1 %v1492_v1 }
 0x363   :  { %v1972_v6 = vpop.trf.xlu0 }
 0x364   :  { %v1496_v7 = vpack.c.bf16 %v1972_v6, %v1970_v26 }
 0x366   :  { %1497 = vmatprep.subr.bf16.mxu1 %v1496_v7 }
 0x367   :  { %v1976_v8 = vpop.trf.xlu0  ;;  %1499 = vmatpush3.bf16.msra.mxu1 %v1496_v7 }
 0x36b   :  { %v1978_v9 = vpop.trf.xlu0 }
 0x36c   :  { %v1500_v10 = vpack.c.bf16 %v1978_v9, %v1976_v8 }
 0x36e   :  { %1501 = vmatprep.subr.bf16.mxu1 %v1500_v10 }
 0x36f   :  { %v1982_v11 = vpop.trf.xlu0  ;;  %1503 = vmatpush3.bf16.msra.mxu1 %v1500_v10 }
 0x373   :  { %v1984_v12 = vpop.trf.xlu0 }
 0x374   :  { %v1504_v13 = vpack.c.bf16 %v1984_v12, %v1982_v11 }
 0x376   :  { %1505 = vmatprep.subr.bf16.mxu1 %v1504_v13 }
 0x377   :  { %v1988_v14 = vpop.trf.xlu0  ;;  %1507 = vmatpush3.bf16.msra.mxu1 %v1504_v13 }
 0x37b   :  { %v1990_v15 = vpop.trf.xlu0 }
 0x37c   :  { %v1508_v16 = vpack.c.bf16 %v1990_v15, %v1988_v14 }
 0x37e   :  { %1509 = vmatprep.subr.bf16.mxu1 %v1508_v16 }
 0x37f   :  { %v1994_v17 = vpop.trf.xlu0  ;;  %1511 = vmatpush3.bf16.msra.mxu1 %v1508_v16 }
 0x383   :  { %v1996_v18 = vpop.trf.xlu0 }
 0x384   :  { %v1512_v19 = vpack.c.bf16 %v1996_v18, %v1994_v17 }
 0x386   :  { %1513 = vmatprep.subr.bf16.mxu1 %v1512_v19 }
 0x387   :  { %v2000_v20 = vpop.trf.xlu0  ;;  %1515 = vmatpush3.bf16.msra.mxu1 %v1512_v19 }
 0x38b   :  { %v2002_v21 = vpop.trf.xlu0 }
 0x38c   :  { %v1516_v22 = vpack.c.bf16 %v2002_v21, %v2000_v20 }
 0x38e   :  { %1517 = vmatprep.subr.bf16.mxu1 %v1516_v22 }
 0x38f   :  { %1519 = vmatpush3.bf16.msra.mxu1 %v1516_v22 }
 0x392   :  { %1326 = vmatmul.mubr.f32.vlgmr.msra.gmra.mrb[32].mxu1 %v838_v23 }
 0x393   :  { %1328 = vmatprep.mubr.f32.mxu1 %v839_v24 }
 0x396   :  { %1329 = vmatmul.mubr.f32.gmra.mrb[34].mxu1 %v840_v25 }
 0x397   :  { %1331 = vmatprep.mubr.f32.mxu1 %v841_v42 }
 0x39a   :  { %1332 = vmatmul.mubr.f32.gmra.mrb[36].mxu1 %v842_v27 }
 0x39b   :  { %1334 = vmatprep.mubr.f32.mxu1 %v843_v28 }
 0x39e   :  { %1335 = vmatmul.mubr.f32.gmra.mrb[38].mxu1 %v844_v29 }
 0x39f   :  { %1337 = vmatprep.mubr.f32.mxu1 %v845_v30 }
 0x3a2   :  { %1338 = vmatmul.mubr.f32.gmra.mrb[40].mxu1 %v846_v31 }
 0x3a3   :  { %1340 = vmatprep.mubr.f32.mxu1 %v847_v32 }
 0x3a6   :  { %1341 = vmatmul.mubr.f32.gmra.mrb[42].mxu1 %v848_v33 }
 0x3a7   :  { %1343 = vmatprep.mubr.f32.mxu1 %v849_v34 }
 0x3aa   :  { %1344 = vmatmul.mubr.f32.gmra.mrb[44].mxu1 %v850_v35 }
 0x3ab   :  { %1346 = vmatprep.mubr.f32.mxu1 %v851_v36 }
 0x3ae   :  { %1347 = vmatmul.mubr.f32.gmra.mrb[46].mxu1 %v852_v39 }
 0x465   :  { %v1327_v41 = vpop.f32.mrb[32].mxu1 }
 0x466   :  { %v999_v37 = vsub.f32 %v1960_v3, %v1327_v41  ;;  %1125 = vst [vmem:[#allocation8 + $0x8] sm:$0xff] %v1327_v41  ;;  %v919_v40 = vpop.f32.mrb[33].mxu1 }
 0x467   :  { %v998_v44 = vsub.f32 %v1958_v2, %v919_v40  ;;  %1124 = vst [vmem:[#allocation8] sm:$0xff] %v919_v40 }
 0x468   :  { %v1017_v45 = vmul.f32 %v999_v37, %v999_v37 }
 0x469   :  { %v1016_v46 = vmul.f32 %v998_v44, %v998_v44  ;;  %v1330_v47 = vpop.f32.mrb[34].mxu1 }
 0x46a   :  { %v1001_v48 = vsub.f32 %v1966_v5, %v1330_v47  ;;  %v929_v49 = vpop.f32.mrb[35].mxu1 }
 0x46b   :  { %v1000_v50 = vsub.f32 %v1964_v4, %v929_v49  ;;  %v1520_v51 = vpack.c.bf16 %v1017_v45, %v1016_v46 }
 0x46c   :  { %v1019_v52 = vmul.f32 %v1001_v48, %v1001_v48 }
 0x46d   :  { %v1018_v53 = vmul.f32 %v1000_v50, %v1000_v50  ;;  %v1333_v54 = vpop.f32.mrb[36].mxu1  ;;  %1521 = vmatprep.subr.bf16.mxu0 %v1520_v51 }
 0x46e   :  { %v1003_v55 = vsub.f32 %v1972_v6, %v1333_v54  ;;  %v939_v56 = vpop.f32.mrb[37].mxu1  ;;  %1523 = vmatpush3.bf16.msra.mxu0 %v1520_v51 }
 0x46f   :  { %v1524_v57 = vpack.c.bf16 %v1019_v52, %v1018_v53  ;;  %v1002_v58 = vsub.f32 %v1970_v26, %v939_v56 }
 0x470   :  { %v1021_v59 = vmul.f32 %v1003_v55, %v1003_v55 }
 0x471   :  { %v1020_v60 = vmul.f32 %v1002_v58, %v1002_v58  ;;  %v1336_v61 = vpop.f32.mrb[38].mxu1  ;;  %1525 = vmatprep.subr.bf16.mxu0 %v1524_v57 }
 0x472   :  { %v1005_v62 = vsub.f32 %v1978_v9, %v1336_v61  ;;  %v949_v0 = vpop.f32.mrb[39].mxu1  ;;  %1527 = vmatpush3.bf16.msra.mxu0 %v1524_v57 }
 0x473   :  { %v1528_v63 = vpack.c.bf16 %v1021_v59, %v1020_v60  ;;  %v1004_v2 = vsub.f32 %v1976_v8, %v949_v0 }
 0x474   :  { %v1023_v3 = vmul.f32 %v1005_v62, %v1005_v62 }
 0x475   :  { %v1022_v43 = vmul.f32 %v1004_v2, %v1004_v2  ;;  %v1339_v4 = vpop.f32.mrb[40].mxu1  ;;  %1529 = vmatprep.subr.bf16.mxu0 %v1528_v63 }
 0x476   :  { %v1007_v5 = vsub.f32 %v1984_v12, %v1339_v4  ;;  %v959_v1 = vpop.f32.mrb[41].mxu1  ;;  %1531 = vmatpush3.bf16.msra.mxu0 %v1528_v63 }
 0x477   :  { %v1532_v26 = vpack.c.bf16 %v1023_v3, %v1022_v43  ;;  %v1006_v6 = vsub.f32 %v1982_v11, %v959_v1 }
 0x478   :  { %v1025_v7 = vmul.f32 %v1007_v5, %v1007_v5 }
 0x479   :  { %v1024_v10 = vmul.f32 %v1006_v6, %v1006_v6  ;;  %v1342_v13 = vpop.f32.mrb[42].mxu1  ;;  %1533 = vmatprep.subr.bf16.mxu0 %v1532_v26 }
 0x47a   :  { %v1009_v9 = vsub.f32 %v1990_v15, %v1342_v13  ;;  %v969_v16 = vpop.f32.mrb[43].mxu1  ;;  %1535 = vmatpush3.bf16.msra.mxu0 %v1532_v26 }
 0x47b   :  { %v1536_v8 = vpack.c.bf16 %v1025_v7, %v1024_v10  ;;  %v1008_v19 = vsub.f32 %v1988_v14, %v969_v16 }
 0x47c   :  { %v1027_v22 = vmul.f32 %v1009_v9, %v1009_v9 }
 0x47d   :  { %v1026_v23 = vmul.f32 %v1008_v19, %v1008_v19  ;;  %v1345_v24 = vpop.f32.mrb[44].mxu1  ;;  %1537 = vmatprep.subr.bf16.mxu0 %v1536_v8 }
 0x47e   :  { %v1011_v12 = vsub.f32 %v1996_v18, %v1345_v24  ;;  %v979_v25 = vpop.f32.mrb[45].mxu1  ;;  %1539 = vmatpush3.bf16.msra.mxu0 %v1536_v8 }
 0x47f   :  { %v1540_v11 = vpack.c.bf16 %v1027_v22, %v1026_v23  ;;  %v1010_v42 = vsub.f32 %v1994_v17, %v979_v25  ;;  %v1015_v17 = vld [vmem:[%s2096_s8 + $0x8] sm:$0xff]  ;;  %s1631_s8 = scalar_lea.vmem %s1134_s5, 512 }
 0x480   :  { %v1029_v27 = vmul.f32 %v1011_v12, %v1011_v12  ;;  %p1632_p10 = scmp.ne.s32.totalorder %s1134_s5, %s1631_s8  ;;  %p1637_p12 = scmp.lt.s32.totalorder %s1631_s8, %s1631_s8 }
 0x481   :  { %v1028_v28 = vmul.f32 %v1010_v42, %v1010_v42  ;;  %v1348_v29 = vpop.f32.mrb[46].mxu1  ;;  %1541 = vmatprep.subr.bf16.mxu0 %v1540_v11 }
 0x482   :  { %v1013_v15 = vsub.f32 %v2002_v21, %v1348_v29  ;;  %v989_v30 = vpop.f32.mrb[47].mxu1  ;;  %1543 = vmatpush3.bf16.msra.mxu0 %v1540_v11  ;;  %p1638_p13 = por %p1637_p12, %p1636_p11 }
 0x483   :  { %v1544_v14 = vpack.c.bf16 %v1029_v27, %v1028_v28  ;;  %v1012_v31 = vsub.f32 %v2000_v20, %v989_v30 }
 0x484   :  { %v1031_v32 = vmul.f32 %v1013_v15, %v1013_v15  ;;  %p1639_p0 = pnand %p1638_p13, %p1632_p10 }
 0x485   :  { %v1030_v33 = vmul.f32 %v1012_v31, %v1012_v31  ;;  %1545 = vmatprep.subr.bf16.mxu0 %v1544_v14 }
 0x486   :  { %1547 = vmatpush3.bf16.msra.mxu0 %v1544_v14 }
 0x487   :  { %v1548_v18 = vpack.c.bf16 %v1031_v32, %v1030_v33 }
 0x489   :  { %1549 = vmatprep.subr.bf16.mxu0 %v1548_v18 }
 0x48a   :  { %1551 = vmatpush3.bf16.msra.mxu0 %v1548_v18 }
 0x48d   :  { %1382 = vmatmul.mubr.f32.vlgmr.msra.gmra.mrb[64].mxu0 %v1015_v17 }
 0x560   :  { %v1383_v34 = vpop.f32.mrb[64].mxu0 }
 0x561   :  { %v1109_v35 = vmul.f32 0.14285715, %v1383_v34  ;;  %v1098_v21 = vpop.f32.mrb[65].mxu0 }
 0x562   :  { %v1108_v36 = vmul.f32 0.14285715, %v1098_v21 }
 0x563   :  { %1561 = vrsqrt.f32 %v1109_v35  ;;  %vm1119_vm1 = vcmp.eq.f32.partialorder %v1109_v35, inf  ;;  %v1122_v37 = vand.u32 2147483648, %v1109_v35  ;;  %vm1121_vm3 = vcmp.eq.f32.partialorder %v1109_v35, 0.0 }
 0x564   :  { %1563 = vrsqrt.f32 %v1108_v36  ;;  %vm1112_vm2 = vcmp.eq.f32.partialorder %v1108_v36, inf  ;;  %v1115_v40 = vand.u32 2147483648, %v1108_v36  ;;  %vm1114_vm4 = vcmp.eq.f32.partialorder %v1108_v36, 0.0 }
 0x56d   :  { %v1562_v39 = vpop.eup %1561 }
 0x56e   :  { %v1564_v20 = vpop.eup %1563  ;;  %v1118_v38 = vmul.f32 %v1562_v39, %v1109_v35 }
 0x56f   :  { %v1111_v41 = vmul.f32 %v1564_v20, %v1108_v36 }
 0x570   :  { %v1120_v44 = vsel %vm1119_vm1, %v1109_v35, %v1118_v38 }
 0x571   :  { %v1113_v45 = vsel %vm1112_vm2, %v1108_v36, %v1111_v41  ;;  %v1123_v46 = vsel %vm1121_vm3, %v1122_v37, %v1120_v44 }
 0x572   :  { %v1116_v47 = vsel %vm1114_vm4, %v1115_v40, %v1113_v45  ;;  %1127 = vst [vmem:[#allocation8 + $0x18] sm:$0xff] %v1123_v46 }
 0x573   :  { %1126 = vst [vmem:[#allocation8 + $0x10] sm:$0xff] %v1116_v47 }
 0x574   :  { %1642 = shalt.err (!%p1639_p0)
}
 0x575   :  { %s1643_s28 = scalar_lea.hbm %s2097_s9, 512 }
 0x576   :  { %p1644_p1 = scmp.ne.s32.totalorder %s2097_s9, %s1643_s28  ;;  %p1647_p2 = scmp.lt.u32.totalorder %s1643_s28, %s2097_s9 }
 0x578   :  { %p1649_p3 = pnand %p1647_p2, %p1644_p1 }
 0x57a   :  { %1652 = shalt.err (!%p1649_p3)
}
 0x57b   :  { %1139 = dma.vmem_to_hbm [thread:$0]  %s1134_s5, 512, %s2097_s9, [#allocation4], %s1664_s1, %s1664_s1, %s1665_s12  }
 0x57c   :  { %1657 = dma.done.wait [#allocation4], 512  }
 0x57d   :  { %1658 = vsyncadd [#allocation4], 4294966784 }
 0x57e   :  { %1143 = vsyncpa [#allocation3], 1 }
 0x57f   :  { %1144 = vsyncpa [#allocation6], 1 }
 0x580   :  { %1145 = vsyncpa [#allocation4], 1 }

</bundles_post_ra>
